<compile_context>
chip_gen: v6e
topology: v6e:2x2x1
jax: 0.10.0
libtpu: 0.0.40
codegen_flags: <defaults>
</compile_context>

<pallas_src>
import functools

import jax
import jax.numpy as jnp
from jax.experimental import pallas as pl
from jax.experimental.pallas import tpu as pltpu  # noqa: F401  (TPU backend)

D_MODEL = 32
NHEAD = 4
FFN_DIM = 64
LN_EPS = 1e-5        # PyTorch nn.LayerNorm default
NEG_INF = -1e30      # additive mask bias (f32 everywhere)


# --------------------------------------------------------------------------
# Packed-parameter layout (shared by host packing and in-kernel slicing)
# --------------------------------------------------------------------------
def _pack_layout(d_model=D_MODEL, ffn_dim=FFN_DIM):
  D, F = d_model, ffn_dim
  layout = {}
  row = 0

  def add(name, rows, cols):
    nonlocal row
    layout[name] = (row, rows, cols)
    row += -(-rows // 8) * 8            # keep every block 8-row (sublane) aligned

  add('sa_in_w', D, 3 * D); add('sa_out_w', D, D)
  add('ca_in_w', D, 3 * D); add('ca_out_w', D, D)
  add('lin1_w', D, F);      add('lin2_w', F, D)
  for nm, c in [('sa_in_b', 3 * D), ('sa_out_b', D), ('ca_in_b', 3 * D),
                ('ca_out_b', D), ('lin1_b', F), ('lin2_b', D),
                ('norm1_g', D), ('norm1_b', D), ('norm3_g', D),
                ('norm3_b', D), ('norm4_g', D), ('norm4_b', D)]:
    add(nm, 1, c)
  n_rows = -(-row // 8) * 8
  n_cols = -(-max(3 * D, F, D) // 128) * 128   # lane-aligned width
  return layout, (n_rows, n_cols)


def pack_params(params, d_model=D_MODEL, ffn_dim=FFN_DIM):
  """One-time host packing of all layer parameters into a single f32 array."""
  lay, (rows, cols) = _pack_layout(d_model, ffn_dim)
  buf = jnp.zeros((rows, cols), jnp.float32)
  for name, (r0, r, c) in lay.items():
    buf = buf.at[r0:r0 + r, 0:c].set(params[name].reshape(r, c).astype(jnp.float32))
  return buf


# --------------------------------------------------------------------------
# Fused decoder-layer kernel (single pallas_call, no grid, all-resident VMEM)
# --------------------------------------------------------------------------
def _decoder_layer_kernel(x_tgt_ref, x_time_ref, enc_f_ref, enc_p_ref,
                          qpad_ref, kpad_ref, pp_ref,
                          out_ref, probs_ref, *, L, B, S, D, H, lay):
  N = L * B
  M = S * L
  dh = D // H
  scale = 1.0 / float(dh) ** 0.5
  f32 = jnp.float32

  def pslice(name):                       # static window of the packed params
    r0, rows, cols = lay[name]
    return pp_ref[r0:r0 + rows, 0:cols]

  def layer_norm(z, gname, bname):
    mu = jnp.mean(z, axis=-1, keepdims=True)
    var = jnp.mean((z - mu) ** 2, axis=-1, keepdims=True)
    return (z - mu) * jax.lax.rsqrt(var + LN_EPS) * pslice(gname) + pslice(bname)

  def softmax(s):                         # EUP approx reciprocal for the denom
    m = jnp.max(s, axis=-1, keepdims=True)
    e = jnp.exp(s - m)
    return e * pl.reciprocal(jnp.sum(e, axis=-1, keepdims=True), approx=True)

  def qkt(a, b):                          # a @ b.T without materializing b.T
    return jax.lax.dot_general(a, b, (((1,), (1,)), ((), ())),
                               preferred_element_type=f32)

  def mm(a, b):
    return jnp.dot(a, b, preferred_element_type=f32)

  def fiota(shape, dim):
    return jax.lax.broadcasted_iota(jnp.int32, shape, dim).astype(f32)

  x_tgt = x_tgt_ref[...]                  # (N, D), row = l*B + b
  x_qk = x_tgt + x_time_ref[...]          # fused pos-embedding add

  # ---- additive attention biases, built in-kernel (no HBM bias tensors) ----
  # self-attn: same batch  <=>  (row mod B) equal; key-padding from qpad row.
  ri, ci = fiota((N, N), 0), fiota((N, N), 1)
  rb = ri - float(B) * jnp.floor(ri / float(B))
  cb = ci - float(B) * jnp.floor(ci / float(B))
  self_ok = (rb == cb) & (qpad_ref[...] < 0.5)
  self_bias = jnp.where(self_ok, f32(0.0), f32(NEG_INF))
  # cross-attn: query l = floor(row/B); key row = s*L + l  =>  key l = row mod L
  qi, ki = fiota((N, M), 0), fiota((N, M), 1)
  ql = jnp.floor(qi / float(B))
  kl = ki - float(L) * jnp.floor(ki / float(L))
  cross_ok = (ql == kl) & (kpad_ref[...] < 0.5)
  cross_bias = jnp.where(cross_ok, f32(0.0), f32(NEG_INF))

  # ---------------- self-attention ----------------
  sa_in_w, sa_in_b = pslice('sa_in_w'), pslice('sa_in_b')
  qk = mm(x_qk, sa_in_w[:, 0:2 * D]) + sa_in_b[:, 0:2 * D]
  q = qk[:, 0:D] * scale
  k = qk[:, D:2 * D]
  v = mm(x_tgt, sa_in_w[:, 2 * D:3 * D]) + sa_in_b[:, 2 * D:3 * D]

  probs_sum = jnp.zeros((N, N), f32)
  ctx_heads = []
  for h in range(H):                      # static unroll over heads
    sl = slice(h * dh, (h + 1) * dh)
    p = softmax(qkt(q[:, sl], k[:, sl]) + self_bias)
    probs_sum = probs_sum + p
    ctx_heads.append(mm(p, v[:, sl]))
  ctx = jnp.concatenate(ctx_heads, axis=-1)                  # (N, D)
  attn = mm(ctx, pslice('sa_out_w')) + pslice('sa_out_b')    # single K=D dot
  tgt1 = layer_norm(x_tgt + attn, 'norm1_g', 'norm1_b')

  probs_ref[...] = probs_sum * (1.0 / H)  # full (N, N), contiguous 2-D store

  # ---------------- cross-attention over encoded features ----------------
  enc_f = enc_f_ref[...]                  # (M, D), row = s*L + l
  enc_k_in = enc_f + enc_p_ref[...]       # fused pos-embedding add
  ca_in_w, ca_in_b = pslice('ca_in_w'), pslice('ca_in_b')
  qc = (mm(tgt1, ca_in_w[:, 0:D]) + ca_in_b[:, 0:D]) * scale
  kc = mm(enc_k_in, ca_in_w[:, D:2 * D]) + ca_in_b[:, D:2 * D]
  vc = mm(enc_f, ca_in_w[:, 2 * D:3 * D]) + ca_in_b[:, 2 * D:3 * D]

  cctx_heads = []
  for h in range(H):
    sl = slice(h * dh, (h + 1) * dh)
    p = softmax(qkt(qc[:, sl], kc[:, sl]) + cross_bias)      # (N, M)
    cctx_heads.append(mm(p, vc[:, sl]))
  cctx = jnp.concatenate(cctx_heads, axis=-1)
  cattn = mm(cctx, pslice('ca_out_w')) + pslice('ca_out_b')
  tgt2 = layer_norm(tgt1 + cattn, 'norm3_g', 'norm3_b')

  # ---------------- feed-forward (linear1 -> relu -> linear2) ----------------
  hid = jnp.maximum(mm(tgt2, pslice('lin1_w')) + pslice('lin1_b'), 0.0)
  ff = mm(hid, pslice('lin2_w')) + pslice('lin2_b')
  out_ref[...] = layer_norm(tgt2 + ff, 'norm4_g', 'norm4_b')


# --------------------------------------------------------------------------
# Wrapper: only free reshapes + two tiny mask reorders around the kernel
# --------------------------------------------------------------------------
def time_decoder_layer(packed_params, query_tgt, query_content=None,
                       query_time=None, query_mask=None, encoded_feature=None,
                       encoded_pos=None, encoded_mask=None):
  del query_content                        # unused by the reference forward
  L, B, D = query_tgt.shape
  S = encoded_feature.shape[0]
  N, M = L * B, S * L
  lay, _ = _pack_layout(D, FFN_DIM)
  f32 = jnp.float32

  x_tgt = query_tgt.reshape(N, D).astype(f32)                 # free reshape
  x_time = (jnp.zeros((N, D), f32) if query_time is None
            else query_time.reshape(N, D).astype(f32))
  enc_f = encoded_feature.reshape(M, D).astype(f32)            # free reshape
  enc_p = (jnp.zeros((M, D), f32) if encoded_pos is None
           else encoded_pos.reshape(M, D).astype(f32))
  qpad = (jnp.zeros((1, N), f32) if query_mask is None
          else query_mask.astype(f32).T.reshape(1, N))         # token order l*B+b
  kpad = (jnp.zeros((1, M), f32) if encoded_mask is None
          else encoded_mask.astype(f32).T.reshape(1, M))       # key order s*L+l

  kernel = functools.partial(_decoder_layer_kernel,
                             L=L, B=B, S=S, D=D, H=NHEAD, lay=lay)
  out2d, probs_full = pl.pallas_call(
      kernel,
      out_shape=(
          jax.ShapeDtypeStruct((N, D), f32),
          jax.ShapeDtypeStruct((N, N), f32),
      ),
      cost_estimate=pl.CostEstimate(flops=1_350_000, transcendentals=9_500,
                                    bytes_accessed=230_000),
  )(x_tgt, x_time, enc_f, enc_p, qpad, kpad, packed_params)

  out = out2d.reshape(L, B, D)                    # rows already l-major: free
  blocks = probs_full.reshape(L, B, L, B)
  idx = jnp.arange(B)
  weights = blocks[:, idx, :, idx]                # (B, L, L) diagonal blocks
  return out, weights


# --------------------------------------------------------------------------
# Parameters (stored pre-transposed: w = pytorch_weight.T, biases as (1, N))
# --------------------------------------------------------------------------
def init_params(key, d_model=D_MODEL, ffn_dim=FFN_DIM):
  ks = jax.random.split(key, 12)
  n = lambda k, shape: (0.02 * jax.random.normal(k, shape)).astype(jnp.float32)
  D, F = d_model, ffn_dim
  return {
      'sa_in_w': n(ks[0], (D, 3 * D)),   # in_proj_weight.T, cols = [q|k|v]
      'sa_in_b': n(ks[1], (1, 3 * D)),
      'sa_out_w': n(ks[2], (D, D)),      # out_proj.weight.T
      'sa_out_b': n(ks[3], (1, D)),
      'ca_in_w': n(ks[4], (D, 3 * D)),
      'ca_in_b': n(ks[5], (1, 3 * D)),
      'ca_out_w': n(ks[6], (D, D)),
      'ca_out_b': n(ks[7], (1, D)),
      'lin1_w': n(ks[8], (D, F)),        # linear1.weight.T
      'lin1_b': n(ks[9], (1, F)),
      'lin2_w': n(ks[10], (F, D)),       # linear2.weight.T
      'lin2_b': n(ks[11], (1, D)),
      'norm1_g': jnp.ones((1, D), jnp.float32),
      'norm1_b': jnp.zeros((1, D), jnp.float32),
      'norm3_g': jnp.ones((1, D), jnp.float32),
      'norm3_b': jnp.zeros((1, D), jnp.float32),
      'norm4_g': jnp.ones((1, D), jnp.float32),
      'norm4_b': jnp.zeros((1, D), jnp.float32),
  }


# --------------------------------------------------------------------------
# Pure-JAX reference (mirrors the PyTorch module) for the correctness check
# --------------------------------------------------------------------------
def _reference_mha(query, key, value, key_padding_mask, in_w, in_b, out_w,
                   out_b, nhead):
  Lq, N, D = query.shape
  S = key.shape[0]
  H, dh = nhead, D // nhead
  q = query @ in_w[:, :D] + in_b[0, :D]
  k = key @ in_w[:, D:2 * D] + in_b[0, D:2 * D]
  v = value @ in_w[:, 2 * D:] + in_b[0, 2 * D:]
  q = q.reshape(Lq, N, H, dh).transpose(1, 2, 0, 3)
  k = k.reshape(S, N, H, dh).transpose(1, 2, 0, 3)
  v = v.reshape(S, N, H, dh).transpose(1, 2, 0, 3)
  s = jnp.einsum('nhqd,nhkd->nhqk', q, k) / jnp.sqrt(jnp.float32(dh))
  if key_padding_mask is not None:
    s = s + jnp.where(key_padding_mask, NEG_INF, 0.0)[:, None, None, :]
  p = jax.nn.softmax(s, axis=-1)
  ctx = jnp.einsum('nhqk,nhkd->nhqd', p, v).transpose(2, 0, 1, 3)
  out = ctx.reshape(Lq, N, D) @ out_w + out_b[0]
  return out, p.mean(axis=1)


def _reference_layer(p, query_tgt, query_time, query_mask, encoded_feature,
                     encoded_pos, encoded_mask):
  def ln(z, g, b):
    mu = jnp.mean(z, axis=-1, keepdims=True)
    var = jnp.mean((z - mu) ** 2, axis=-1, keepdims=True)
    return (z - mu) * jax.lax.rsqrt(var + LN_EPS) * g[0] + b[0]

  qk = query_tgt if query_time is None else query_tgt + query_time
  t2, w = _reference_mha(qk, qk, query_tgt, query_mask, p['sa_in_w'],
                         p['sa_in_b'], p['sa_out_w'], p['sa_out_b'], NHEAD)
  tgt = ln(query_tgt + t2, p['norm1_g'], p['norm1_b'])
  kc = (encoded_feature if encoded_pos is None
        else encoded_feature + encoded_pos)
  t2c, _ = _reference_mha(jnp.transpose(tgt, (1, 0, 2)), kc, encoded_feature,
                          encoded_mask, p['ca_in_w'], p['ca_in_b'],
                          p['ca_out_w'], p['ca_out_b'], NHEAD)
  tgt = ln(tgt + jnp.transpose(t2c, (1, 0, 2)), p['norm3_g'], p['norm3_b'])
  ff = jnp.maximum(tgt @ p['lin1_w'] + p['lin1_b'][0], 0.0) \
      @ p['lin2_w'] + p['lin2_b'][0]
  return ln(tgt + ff, p['norm4_g'], p['norm4_b']), w


if __name__ == "__main__":
  L, B, D, S = 8, 2, D_MODEL, 16   # num queries, batch, hidden, encoded length

  key = jax.random.PRNGKey(0)
  k = jax.random.split(key, 8)

  query_tgt = jax.random.normal(k[0], (L, B, D), jnp.float32)
  query_time = jax.random.normal(k[1], (L, B, D), jnp.float32)
  query_content = jax.random.normal(k[2], (L, B, D), jnp.float32)  # unused
  # self-attn key_padding_mask: (batch=B, keys=L); True = padded
  query_mask = jnp.zeros((B, L), bool).at[1, L - 1].set(True)
  # cross-attn "batch" is L after the permute, so encoded tensors carry L
  encoded_feature = jax.random.normal(k[3], (S, L, D), jnp.float32)
  encoded_pos = jax.random.normal(k[4], (S, L, D), jnp.float32)
  encoded_mask = jnp.zeros((L, S), bool).at[:, S - 2:].set(True)

  params = init_params(k[5])
  packed = pack_params(params)           # one-time host packing (single DMA)

  fwd = jax.jit(functools.partial(time_decoder_layer, packed))
  out, weights = fwd(query_tgt, query_content, query_time, query_mask,
                     encoded_feature, encoded_pos, encoded_mask)
  jax.block_until_ready((out, weights))

  assert out.shape == (L, B, D) and weights.shape == (B, L, L)
  assert bool(jnp.all(jnp.isfinite(out))) and bool(jnp.all(jnp.isfinite(weights)))

  # correctness check against a plain-JAX reference of the PyTorch module
  ref_out, ref_w = _reference_layer(params, query_tgt, query_time, query_mask,
                                    encoded_feature, encoded_pos, encoded_mask)
  assert jnp.allclose(out, ref_out, rtol=1e-2, atol=1e-2)
  assert jnp.allclose(weights, ref_w, rtol=1e-2, atol=3e-3)
  print("KERNEL_OK")
</pallas_src>

<mosaic_0001>
module attributes {stable_mosaic.version = 11 : i64} {
  func.func @_decoder_layer_kernel(%arg0: memref<16x32xf32, #tpu.memory_space<vmem>>, %arg1: memref<16x32xf32, #tpu.memory_space<vmem>>, %arg2: memref<128x32xf32, #tpu.memory_space<vmem>>, %arg3: memref<128x32xf32, #tpu.memory_space<vmem>>, %arg4: memref<1x16xf32, #tpu.memory_space<vmem>>, %arg5: memref<1x128xf32, #tpu.memory_space<vmem>>, %arg6: memref<320x128xf32, #tpu.memory_space<vmem>>, %arg7: memref<16x32xf32, #tpu.memory_space<vmem>>, %arg8: memref<16x16xf32, #tpu.memory_space<vmem>>) attributes {dimension_semantics = [], scalar_prefetch = 0 : i64, scratch_operands = 0 : i64, tpu.core_type = #tpu.core_type<tc>} {
    %c0 = arith.constant 0 : index
    %c0_0 = arith.constant 0 : index
    %0 = vector.load %arg0[%c0, %c0_0] : memref<16x32xf32, #tpu.memory_space<vmem>>, vector<16x32xf32>
    %c0_1 = arith.constant 0 : index
    %c0_2 = arith.constant 0 : index
    %1 = vector.load %arg1[%c0_1, %c0_2] : memref<16x32xf32, #tpu.memory_space<vmem>>, vector<16x32xf32>
    %2 = arith.addf %0, %1 : vector<16x32xf32>
    %3 = tpu.iota {dimensions = array<i32: 0>} : vector<16x16xi32>
    %4 = arith.sitofp %3 : vector<16x16xi32> to vector<16x16xf32>
    %5 = tpu.iota {dimensions = array<i32: 1>} : vector<16x16xi32>
    %6 = arith.sitofp %5 : vector<16x16xi32> to vector<16x16xf32>
    %cst = arith.constant 2.000000e+00 : f32
    %7 = vector.broadcast %cst : f32 to vector<16x16xf32>
    %8 = arith.divf %4, %7 : vector<16x16xf32>
    %9 = math.floor %8 : vector<16x16xf32>
    %cst_3 = arith.constant 2.000000e+00 : f32
    %10 = vector.broadcast %cst_3 : f32 to vector<16x16xf32>
    %11 = arith.mulf %10, %9 : vector<16x16xf32>
    %12 = arith.subf %4, %11 : vector<16x16xf32>
    %cst_4 = arith.constant 2.000000e+00 : f32
    %13 = vector.broadcast %cst_4 : f32 to vector<16x16xf32>
    %14 = arith.divf %6, %13 : vector<16x16xf32>
    %15 = math.floor %14 : vector<16x16xf32>
    %cst_5 = arith.constant 2.000000e+00 : f32
    %16 = vector.broadcast %cst_5 : f32 to vector<16x16xf32>
    %17 = arith.mulf %16, %15 : vector<16x16xf32>
    %18 = arith.subf %6, %17 : vector<16x16xf32>
    %19 = arith.cmpf oeq, %12, %18 : vector<16x16xf32>
    %c0_6 = arith.constant 0 : index
    %c0_7 = arith.constant 0 : index
    %20 = vector.load %arg4[%c0_6, %c0_7] : memref<1x16xf32, #tpu.memory_space<vmem>>, vector<1x16xf32>
    %cst_8 = arith.constant 5.000000e-01 : f32
    %21 = vector.broadcast %cst_8 : f32 to vector<1x16xf32>
    %22 = arith.cmpf olt, %20, %21 : vector<1x16xf32>
    %23 = vector.broadcast %22 : vector<1x16xi1> to vector<16x16xi1>
    %24 = arith.andi %19, %23 : vector<16x16xi1>
    %cst_9 = arith.constant 0.000000e+00 : f32
    %cst_10 = arith.constant -1.000000e+30 : f32
    %25 = vector.broadcast %cst_9 : f32 to vector<16x16xf32>
    %26 = vector.broadcast %cst_10 : f32 to vector<16x16xf32>
    %27 = arith.select %24, %25, %26 : vector<16x16xi1>, vector<16x16xf32>
    %28 = tpu.iota {dimensions = array<i32: 0>} : vector<16x128xi32>
    %29 = arith.sitofp %28 : vector<16x128xi32> to vector<16x128xf32>
    %30 = tpu.iota {dimensions = array<i32: 1>} : vector<16x128xi32>
    %31 = arith.sitofp %30 : vector<16x128xi32> to vector<16x128xf32>
    %cst_11 = arith.constant 2.000000e+00 : f32
    %32 = vector.broadcast %cst_11 : f32 to vector<16x128xf32>
    %33 = arith.divf %29, %32 : vector<16x128xf32>
    %34 = math.floor %33 : vector<16x128xf32>
    %cst_12 = arith.constant 8.000000e+00 : f32
    %35 = vector.broadcast %cst_12 : f32 to vector<16x128xf32>
    %36 = arith.divf %31, %35 : vector<16x128xf32>
    %37 = math.floor %36 : vector<16x128xf32>
    %cst_13 = arith.constant 8.000000e+00 : f32
    %38 = vector.broadcast %cst_13 : f32 to vector<16x128xf32>
    %39 = arith.mulf %38, %37 : vector<16x128xf32>
    %40 = arith.subf %31, %39 : vector<16x128xf32>
    %41 = arith.cmpf oeq, %34, %40 : vector<16x128xf32>
    %c0_14 = arith.constant 0 : index
    %c0_15 = arith.constant 0 : index
    %42 = vector.load %arg5[%c0_14, %c0_15] : memref<1x128xf32, #tpu.memory_space<vmem>>, vector<1x128xf32>
    %cst_16 = arith.constant 5.000000e-01 : f32
    %43 = vector.broadcast %cst_16 : f32 to vector<1x128xf32>
    %44 = arith.cmpf olt, %42, %43 : vector<1x128xf32>
    %45 = vector.broadcast %44 : vector<1x128xi1> to vector<16x128xi1>
    %46 = arith.andi %41, %45 : vector<16x128xi1>
    %cst_17 = arith.constant 0.000000e+00 : f32
    %cst_18 = arith.constant -1.000000e+30 : f32
    %47 = vector.broadcast %cst_17 : f32 to vector<16x128xf32>
    %48 = vector.broadcast %cst_18 : f32 to vector<16x128xf32>
    %49 = arith.select %46, %47, %48 : vector<16x128xi1>, vector<16x128xf32>
    %c0_19 = arith.constant 0 : index
    %c0_20 = arith.constant 0 : index
    %50 = vector.load %arg6[%c0_19, %c0_20] : memref<320x128xf32, #tpu.memory_space<vmem>>, vector<32x96xf32>
    %c224 = arith.constant 224 : index
    %c0_21 = arith.constant 0 : index
    %51 = vector.load %arg6[%c224, %c0_21] : memref<320x128xf32, #tpu.memory_space<vmem>>, vector<1x96xf32>
    %52 = vector.extract_strided_slice %50 {offsets = [0, 0], sizes = [32, 64], strides = [1, 1]} : vector<32x96xf32> to vector<32x64xf32>
    %cst_22 = arith.constant dense<0.000000e+00> : vector<16x64xf32>
    %53 = tpu.matmul %2, %52, %cst_22 {dimension_numbers = #tpu.dot_dimension_numbers<[1], [0], [0], [1], [0, 0, 1, 1], [], []>} : vector<16x32xf32>, vector<32x64xf32>, vector<16x64xf32> -> vector<16x64xf32>
    %54 = vector.extract_strided_slice %51 {offsets = [0, 0], sizes = [1, 64], strides = [1, 1]} : vector<1x96xf32> to vector<1x64xf32>
    %55 = vector.broadcast %54 : vector<1x64xf32> to vector<16x64xf32>
    %56 = arith.addf %53, %55 : vector<16x64xf32>
    %57 = vector.extract_strided_slice %56 {offsets = [0, 0], sizes = [16, 32], strides = [1, 1]} : vector<16x64xf32> to vector<16x32xf32>
    %cst_23 = arith.constant 0.353553385 : f32
    %58 = vector.broadcast %cst_23 : f32 to vector<16x32xf32>
    %59 = arith.mulf %57, %58 : vector<16x32xf32>
    %60 = vector.extract_strided_slice %56 {offsets = [0, 32], sizes = [16, 32], strides = [1, 1]} : vector<16x64xf32> to vector<16x32xf32>
    %61 = vector.extract_strided_slice %50 {offsets = [0, 64], sizes = [32, 32], strides = [1, 1]} : vector<32x96xf32> to vector<32x32xf32>
    %cst_24 = arith.constant dense<0.000000e+00> : vector<16x32xf32>
    %62 = tpu.matmul %0, %61, %cst_24 {dimension_numbers = #tpu.dot_dimension_numbers<[1], [0], [0], [1], [0, 0, 1, 1], [], []>} : vector<16x32xf32>, vector<32x32xf32>, vector<16x32xf32> -> vector<16x32xf32>
    %63 = vector.extract_strided_slice %51 {offsets = [0, 64], sizes = [1, 32], strides = [1, 1]} : vector<1x96xf32> to vector<1x32xf32>
    %64 = vector.broadcast %63 : vector<1x32xf32> to vector<16x32xf32>
    %65 = arith.addf %62, %64 : vector<16x32xf32>
    %cst_25 = arith.constant 0.000000e+00 : f32
    %66 = vector.broadcast %cst_25 : f32 to vector<16x16xf32>
    %67 = vector.extract_strided_slice %59 {offsets = [0, 0], sizes = [16, 8], strides = [1, 1]} : vector<16x32xf32> to vector<16x8xf32>
    %68 = vector.extract_strided_slice %60 {offsets = [0, 0], sizes = [16, 8], strides = [1, 1]} : vector<16x32xf32> to vector<16x8xf32>
    %cst_26 = arith.constant dense<0.000000e+00> : vector<16x16xf32>
    %69 = tpu.matmul %67, %68, %cst_26 {dimension_numbers = #tpu.dot_dimension_numbers<[1], [1], [0], [0], [0, 0, 1, 0], [], []>} : vector<16x8xf32>, vector<16x8xf32>, vector<16x16xf32> -> vector<16x16xf32>
    %70 = arith.addf %69, %27 : vector<16x16xf32>
    %cst_27 = arith.constant dense<0xFF800000> : vector<16xf32>
    %71 = vector.multi_reduction <maximumf>, %70, %cst_27 [1] : vector<16x16xf32> to vector<16xf32>
    %72 = vector.shape_cast %71 : vector<16xf32> to vector<16x1xf32>
    %73 = vector.broadcast %72 : vector<16x1xf32> to vector<16x16xf32>
    %74 = arith.subf %70, %73 : vector<16x16xf32>
    %75 = math.exp %74 : vector<16x16xf32>
    %cst_28 = arith.constant dense<0.000000e+00> : vector<16xf32>
    %76 = vector.multi_reduction <add>, %75, %cst_28 [1] : vector<16x16xf32> to vector<16xf32>
    %77 = vector.shape_cast %76 : vector<16xf32> to vector<16x1xf32>
    %78 = tpu.reciprocal %77 {approx = true} : vector<16x1xf32> -> vector<16x1xf32>
    %79 = vector.broadcast %78 : vector<16x1xf32> to vector<16x16xf32>
    %80 = arith.mulf %75, %79 : vector<16x16xf32>
    %81 = arith.addf %66, %80 : vector<16x16xf32>
    %82 = vector.extract_strided_slice %65 {offsets = [0, 0], sizes = [16, 8], strides = [1, 1]} : vector<16x32xf32> to vector<16x8xf32>
    %cst_29 = arith.constant dense<0.000000e+00> : vector<16x8xf32>
    %83 = tpu.matmul %80, %82, %cst_29 {dimension_numbers = #tpu.dot_dimension_numbers<[1], [0], [0], [1], [0, 0, 1, 1], [], []>} : vector<16x16xf32>, vector<16x8xf32>, vector<16x8xf32> -> vector<16x8xf32>
    %84 = vector.extract_strided_slice %59 {offsets = [0, 8], sizes = [16, 8], strides = [1, 1]} : vector<16x32xf32> to vector<16x8xf32>
    %85 = vector.extract_strided_slice %60 {offsets = [0, 8], sizes = [16, 8], strides = [1, 1]} : vector<16x32xf32> to vector<16x8xf32>
    %cst_30 = arith.constant dense<0.000000e+00> : vector<16x16xf32>
    %86 = tpu.matmul %84, %85, %cst_30 {dimension_numbers = #tpu.dot_dimension_numbers<[1], [1], [0], [0], [0, 0, 1, 0], [], []>} : vector<16x8xf32>, vector<16x8xf32>, vector<16x16xf32> -> vector<16x16xf32>
    %87 = arith.addf %86, %27 : vector<16x16xf32>
    %cst_31 = arith.constant dense<0xFF800000> : vector<16xf32>
    %88 = vector.multi_reduction <maximumf>, %87, %cst_31 [1] : vector<16x16xf32> to vector<16xf32>
    %89 = vector.shape_cast %88 : vector<16xf32> to vector<16x1xf32>
    %90 = vector.broadcast %89 : vector<16x1xf32> to vector<16x16xf32>
    %91 = arith.subf %87, %90 : vector<16x16xf32>
    %92 = math.exp %91 : vector<16x16xf32>
    %cst_32 = arith.constant dense<0.000000e+00> : vector<16xf32>
    %93 = vector.multi_reduction <add>, %92, %cst_32 [1] : vector<16x16xf32> to vector<16xf32>
    %94 = vector.shape_cast %93 : vector<16xf32> to vector<16x1xf32>
    %95 = tpu.reciprocal %94 {approx = true} : vector<16x1xf32> -> vector<16x1xf32>
    %96 = vector.broadcast %95 : vector<16x1xf32> to vector<16x16xf32>
    %97 = arith.mulf %92, %96 : vector<16x16xf32>
    %98 = arith.addf %81, %97 : vector<16x16xf32>
    %99 = vector.extract_strided_slice %65 {offsets = [0, 8], sizes = [16, 8], strides = [1, 1]} : vector<16x32xf32> to vector<16x8xf32>
    %cst_33 = arith.constant dense<0.000000e+00> : vector<16x8xf32>
    %100 = tpu.matmul %97, %99, %cst_33 {dimension_numbers = #tpu.dot_dimension_numbers<[1], [0], [0], [1], [0, 0, 1, 1], [], []>} : vector<16x16xf32>, vector<16x8xf32>, vector<16x8xf32> -> vector<16x8xf32>
    %101 = vector.extract_strided_slice %59 {offsets = [0, 16], sizes = [16, 8], strides = [1, 1]} : vector<16x32xf32> to vector<16x8xf32>
    %102 = vector.extract_strided_slice %60 {offsets = [0, 16], sizes = [16, 8], strides = [1, 1]} : vector<16x32xf32> to vector<16x8xf32>
    %cst_34 = arith.constant dense<0.000000e+00> : vector<16x16xf32>
    %103 = tpu.matmul %101, %102, %cst_34 {dimension_numbers = #tpu.dot_dimension_numbers<[1], [1], [0], [0], [0, 0, 1, 0], [], []>} : vector<16x8xf32>, vector<16x8xf32>, vector<16x16xf32> -> vector<16x16xf32>
    %104 = arith.addf %103, %27 : vector<16x16xf32>
    %cst_35 = arith.constant dense<0xFF800000> : vector<16xf32>
    %105 = vector.multi_reduction <maximumf>, %104, %cst_35 [1] : vector<16x16xf32> to vector<16xf32>
    %106 = vector.shape_cast %105 : vector<16xf32> to vector<16x1xf32>
    %107 = vector.broadcast %106 : vector<16x1xf32> to vector<16x16xf32>
    %108 = arith.subf %104, %107 : vector<16x16xf32>
    %109 = math.exp %108 : vector<16x16xf32>
    %cst_36 = arith.constant dense<0.000000e+00> : vector<16xf32>
    %110 = vector.multi_reduction <add>, %109, %cst_36 [1] : vector<16x16xf32> to vector<16xf32>
    %111 = vector.shape_cast %110 : vector<16xf32> to vector<16x1xf32>
    %112 = tpu.reciprocal %111 {approx = true} : vector<16x1xf32> -> vector<16x1xf32>
    %113 = vector.broadcast %112 : vector<16x1xf32> to vector<16x16xf32>
    %114 = arith.mulf %109, %113 : vector<16x16xf32>
    %115 = arith.addf %98, %114 : vector<16x16xf32>
    %116 = vector.extract_strided_slice %65 {offsets = [0, 16], sizes = [16, 8], strides = [1, 1]} : vector<16x32xf32> to vector<16x8xf32>
    %cst_37 = arith.constant dense<0.000000e+00> : vector<16x8xf32>
    %117 = tpu.matmul %114, %116, %cst_37 {dimension_numbers = #tpu.dot_dimension_numbers<[1], [0], [0], [1], [0, 0, 1, 1], [], []>} : vector<16x16xf32>, vector<16x8xf32>, vector<16x8xf32> -> vector<16x8xf32>
    %118 = vector.extract_strided_slice %59 {offsets = [0, 24], sizes = [16, 8], strides = [1, 1]} : vector<16x32xf32> to vector<16x8xf32>
    %119 = vector.extract_strided_slice %60 {offsets = [0, 24], sizes = [16, 8], strides = [1, 1]} : vector<16x32xf32> to vector<16x8xf32>
    %cst_38 = arith.constant dense<0.000000e+00> : vector<16x16xf32>
    %120 = tpu.matmul %118, %119, %cst_38 {dimension_numbers = #tpu.dot_dimension_numbers<[1], [1], [0], [0], [0, 0, 1, 0], [], []>} : vector<16x8xf32>, vector<16x8xf32>, vector<16x16xf32> -> vector<16x16xf32>
    %121 = arith.addf %120, %27 : vector<16x16xf32>
    %cst_39 = arith.constant dense<0xFF800000> : vector<16xf32>
    %122 = vector.multi_reduction <maximumf>, %121, %cst_39 [1] : vector<16x16xf32> to vector<16xf32>
    %123 = vector.shape_cast %122 : vector<16xf32> to vector<16x1xf32>
    %124 = vector.broadcast %123 : vector<16x1xf32> to vector<16x16xf32>
    %125 = arith.subf %121, %124 : vector<16x16xf32>
    %126 = math.exp %125 : vector<16x16xf32>
    %cst_40 = arith.constant dense<0.000000e+00> : vector<16xf32>
    %127 = vector.multi_reduction <add>, %126, %cst_40 [1] : vector<16x16xf32> to vector<16xf32>
    %128 = vector.shape_cast %127 : vector<16xf32> to vector<16x1xf32>
    %129 = tpu.reciprocal %128 {approx = true} : vector<16x1xf32> -> vector<16x1xf32>
    %130 = vector.broadcast %129 : vector<16x1xf32> to vector<16x16xf32>
    %131 = arith.mulf %126, %130 : vector<16x16xf32>
    %132 = arith.addf %115, %131 : vector<16x16xf32>
    %133 = vector.extract_strided_slice %65 {offsets = [0, 24], sizes = [16, 8], strides = [1, 1]} : vector<16x32xf32> to vector<16x8xf32>
    %cst_41 = arith.constant dense<0.000000e+00> : vector<16x8xf32>
    %134 = tpu.matmul %131, %133, %cst_41 {dimension_numbers = #tpu.dot_dimension_numbers<[1], [0], [0], [1], [0, 0, 1, 1], [], []>} : vector<16x16xf32>, vector<16x8xf32>, vector<16x8xf32> -> vector<16x8xf32>
    %135 = tpu.concatenate %83, %100, %117, %134 in 1 : vector<16x8xf32>, vector<16x8xf32>, vector<16x8xf32>, vector<16x8xf32> -> vector<16x32xf32>
    %c32 = arith.constant 32 : index
    %c0_42 = arith.constant 0 : index
    %136 = vector.load %arg6[%c32, %c0_42] : memref<320x128xf32, #tpu.memory_space<vmem>>, vector<32x32xf32>
    %cst_43 = arith.constant dense<0.000000e+00> : vector<16x32xf32>
    %137 = tpu.matmul %135, %136, %cst_43 {dimension_numbers = #tpu.dot_dimension_numbers<[1], [0], [0], [1], [0, 0, 1, 1], [], []>} : vector<16x32xf32>, vector<32x32xf32>, vector<16x32xf32> -> vector<16x32xf32>
    %c232 = arith.constant 232 : index
    %c0_44 = arith.constant 0 : index
    %138 = vector.load %arg6[%c232, %c0_44] : memref<320x128xf32, #tpu.memory_space<vmem>>, vector<1x32xf32>
    %139 = vector.broadcast %138 : vector<1x32xf32> to vector<16x32xf32>
    %140 = arith.addf %137, %139 : vector<16x32xf32>
    %141 = arith.addf %0, %140 : vector<16x32xf32>
    %cst_45 = arith.constant dense<0.000000e+00> : vector<16xf32>
    %142 = vector.multi_reduction <add>, %141, %cst_45 [1] : vector<16x32xf32> to vector<16xf32>
    %143 = vector.shape_cast %142 : vector<16xf32> to vector<16x1xf32>
    %cst_46 = arith.constant 3.200000e+01 : f32
    %144 = vector.broadcast %cst_46 : f32 to vector<16x1xf32>
    %145 = arith.divf %143, %144 : vector<16x1xf32>
    %146 = vector.broadcast %145 : vector<16x1xf32> to vector<16x32xf32>
    %147 = arith.subf %141, %146 : vector<16x32xf32>
    %148 = arith.mulf %147, %147 : vector<16x32xf32>
    %cst_47 = arith.constant dense<0.000000e+00> : vector<16xf32>
    %149 = vector.multi_reduction <add>, %148, %cst_47 [1] : vector<16x32xf32> to vector<16xf32>
    %150 = vector.shape_cast %149 : vector<16xf32> to vector<16x1xf32>
    %cst_48 = arith.constant 3.200000e+01 : f32
    %151 = vector.broadcast %cst_48 : f32 to vector<16x1xf32>
    %152 = arith.divf %150, %151 : vector<16x1xf32>
    %153 = vector.broadcast %145 : vector<16x1xf32> to vector<16x32xf32>
    %154 = arith.subf %141, %153 : vector<16x32xf32>
    %cst_49 = arith.constant 9.99999974E-6 : f32
    %155 = vector.broadcast %cst_49 : f32 to vector<16x1xf32>
    %156 = arith.addf %152, %155 : vector<16x1xf32>
    %157 = math.rsqrt %156 : vector<16x1xf32>
    %158 = vector.broadcast %157 : vector<16x1xf32> to vector<16x32xf32>
    %159 = arith.mulf %154, %158 : vector<16x32xf32>
    %c272 = arith.constant 272 : index
    %c0_50 = arith.constant 0 : index
    %160 = vector.load %arg6[%c272, %c0_50] : memref<320x128xf32, #tpu.memory_space<vmem>>, vector<1x32xf32>
    %161 = vector.broadcast %160 : vector<1x32xf32> to vector<16x32xf32>
    %162 = arith.mulf %159, %161 : vector<16x32xf32>
    %c280 = arith.constant 280 : index
    %c0_51 = arith.constant 0 : index
    %163 = vector.load %arg6[%c280, %c0_51] : memref<320x128xf32, #tpu.memory_space<vmem>>, vector<1x32xf32>
    %164 = vector.broadcast %163 : vector<1x32xf32> to vector<16x32xf32>
    %165 = arith.addf %162, %164 : vector<16x32xf32>
    %cst_52 = arith.constant 2.500000e-01 : f32
    %166 = vector.broadcast %cst_52 : f32 to vector<16x16xf32>
    %167 = arith.mulf %132, %166 : vector<16x16xf32>
    %c0_53 = arith.constant 0 : index
    %c0_54 = arith.constant 0 : index
    %168 = vector.load %arg8[%c0_53, %c0_54] : memref<16x16xf32, #tpu.memory_space<vmem>>, vector<16x16xf32>
    tpu.vector_store %arg8[%c0_53, %c0_54], %167 {strides = array<i32>} : memref<16x16xf32, #tpu.memory_space<vmem>>, vector<16x16xf32>,
    %c0_55 = arith.constant 0 : index
    %c0_56 = arith.constant 0 : index
    %169 = vector.load %arg2[%c0_55, %c0_56] : memref<128x32xf32, #tpu.memory_space<vmem>>, vector<128x32xf32>
    %c0_57 = arith.constant 0 : index
    %c0_58 = arith.constant 0 : index
    %170 = vector.load %arg3[%c0_57, %c0_58] : memref<128x32xf32, #tpu.memory_space<vmem>>, vector<128x32xf32>
    %171 = arith.addf %169, %170 : vector<128x32xf32>
    %c64 = arith.constant 64 : index
    %c0_59 = arith.constant 0 : index
    %172 = vector.load %arg6[%c64, %c0_59] : memref<320x128xf32, #tpu.memory_space<vmem>>, vector<32x96xf32>
    %c240 = arith.constant 240 : index
    %c0_60 = arith.constant 0 : index
    %173 = vector.load %arg6[%c240, %c0_60] : memref<320x128xf32, #tpu.memory_space<vmem>>, vector<1x96xf32>
    %174 = vector.extract_strided_slice %172 {offsets = [0, 0], sizes = [32, 32], strides = [1, 1]} : vector<32x96xf32> to vector<32x32xf32>
    %cst_61 = arith.constant dense<0.000000e+00> : vector<16x32xf32>
    %175 = tpu.matmul %165, %174, %cst_61 {dimension_numbers = #tpu.dot_dimension_numbers<[1], [0], [0], [1], [0, 0, 1, 1], [], []>} : vector<16x32xf32>, vector<32x32xf32>, vector<16x32xf32> -> vector<16x32xf32>
    %176 = vector.extract_strided_slice %173 {offsets = [0, 0], sizes = [1, 32], strides = [1, 1]} : vector<1x96xf32> to vector<1x32xf32>
    %177 = vector.broadcast %176 : vector<1x32xf32> to vector<16x32xf32>
    %178 = arith.addf %175, %177 : vector<16x32xf32>
    %cst_62 = arith.constant 0.353553385 : f32
    %179 = vector.broadcast %cst_62 : f32 to vector<16x32xf32>
    %180 = arith.mulf %178, %179 : vector<16x32xf32>
    %181 = vector.extract_strided_slice %172 {offsets = [0, 32], sizes = [32, 32], strides = [1, 1]} : vector<32x96xf32> to vector<32x32xf32>
    %cst_63 = arith.constant dense<0.000000e+00> : vector<128x32xf32>
    %182 = tpu.matmul %171, %181, %cst_63 {dimension_numbers = #tpu.dot_dimension_numbers<[1], [0], [0], [1], [0, 0, 1, 1], [], []>} : vector<128x32xf32>, vector<32x32xf32>, vector<128x32xf32> -> vector<128x32xf32>
    %183 = vector.extract_strided_slice %173 {offsets = [0, 32], sizes = [1, 32], strides = [1, 1]} : vector<1x96xf32> to vector<1x32xf32>
    %184 = vector.broadcast %183 : vector<1x32xf32> to vector<128x32xf32>
    %185 = arith.addf %182, %184 : vector<128x32xf32>
    %186 = vector.extract_strided_slice %172 {offsets = [0, 64], sizes = [32, 32], strides = [1, 1]} : vector<32x96xf32> to vector<32x32xf32>
    %cst_64 = arith.constant dense<0.000000e+00> : vector<128x32xf32>
    %187 = tpu.matmul %169, %186, %cst_64 {dimension_numbers = #tpu.dot_dimension_numbers<[1], [0], [0], [1], [0, 0, 1, 1], [], []>} : vector<128x32xf32>, vector<32x32xf32>, vector<128x32xf32> -> vector<128x32xf32>
    %188 = vector.extract_strided_slice %173 {offsets = [0, 64], sizes = [1, 32], strides = [1, 1]} : vector<1x96xf32> to vector<1x32xf32>
    %189 = vector.broadcast %188 : vector<1x32xf32> to vector<128x32xf32>
    %190 = arith.addf %187, %189 : vector<128x32xf32>
    %191 = vector.extract_strided_slice %180 {offsets = [0, 0], sizes = [16, 8], strides = [1, 1]} : vector<16x32xf32> to vector<16x8xf32>
    %192 = vector.extract_strided_slice %185 {offsets = [0, 0], sizes = [128, 8], strides = [1, 1]} : vector<128x32xf32> to vector<128x8xf32>
    %cst_65 = arith.constant dense<0.000000e+00> : vector<16x128xf32>
    %193 = tpu.matmul %191, %192, %cst_65 {dimension_numbers = #tpu.dot_dimension_numbers<[1], [1], [0], [0], [0, 0, 1, 0], [], []>} : vector<16x8xf32>, vector<128x8xf32>, vector<16x128xf32> -> vector<16x128xf32>
    %194 = arith.addf %193, %49 : vector<16x128xf32>
    %cst_66 = arith.constant dense<0xFF800000> : vector<16xf32>
    %195 = vector.multi_reduction <maximumf>, %194, %cst_66 [1] : vector<16x128xf32> to vector<16xf32>
    %196 = vector.shape_cast %195 : vector<16xf32> to vector<16x1xf32>
    %197 = vector.broadcast %196 : vector<16x1xf32> to vector<16x128xf32>
    %198 = arith.subf %194, %197 : vector<16x128xf32>
    %199 = math.exp %198 : vector<16x128xf32>
    %cst_67 = arith.constant dense<0.000000e+00> : vector<16xf32>
    %200 = vector.multi_reduction <add>, %199, %cst_67 [1] : vector<16x128xf32> to vector<16xf32>
    %201 = vector.shape_cast %200 : vector<16xf32> to vector<16x1xf32>
    %202 = tpu.reciprocal %201 {approx = true} : vector<16x1xf32> -> vector<16x1xf32>
    %203 = vector.broadcast %202 : vector<16x1xf32> to vector<16x128xf32>
    %204 = arith.mulf %199, %203 : vector<16x128xf32>
    %205 = vector.extract_strided_slice %190 {offsets = [0, 0], sizes = [128, 8], strides = [1, 1]} : vector<128x32xf32> to vector<128x8xf32>
    %cst_68 = arith.constant dense<0.000000e+00> : vector<16x8xf32>
    %206 = tpu.matmul %204, %205, %cst_68 {dimension_numbers = #tpu.dot_dimension_numbers<[1], [0], [0], [1], [0, 0, 1, 1], [], []>} : vector<16x128xf32>, vector<128x8xf32>, vector<16x8xf32> -> vector<16x8xf32>
    %207 = vector.extract_strided_slice %180 {offsets = [0, 8], sizes = [16, 8], strides = [1, 1]} : vector<16x32xf32> to vector<16x8xf32>
    %208 = vector.extract_strided_slice %185 {offsets = [0, 8], sizes = [128, 8], strides = [1, 1]} : vector<128x32xf32> to vector<128x8xf32>
    %cst_69 = arith.constant dense<0.000000e+00> : vector<16x128xf32>
    %209 = tpu.matmul %207, %208, %cst_69 {dimension_numbers = #tpu.dot_dimension_numbers<[1], [1], [0], [0], [0, 0, 1, 0], [], []>} : vector<16x8xf32>, vector<128x8xf32>, vector<16x128xf32> -> vector<16x128xf32>
    %210 = arith.addf %209, %49 : vector<16x128xf32>
    %cst_70 = arith.constant dense<0xFF800000> : vector<16xf32>
    %211 = vector.multi_reduction <maximumf>, %210, %cst_70 [1] : vector<16x128xf32> to vector<16xf32>
    %212 = vector.shape_cast %211 : vector<16xf32> to vector<16x1xf32>
    %213 = vector.broadcast %212 : vector<16x1xf32> to vector<16x128xf32>
    %214 = arith.subf %210, %213 : vector<16x128xf32>
    %215 = math.exp %214 : vector<16x128xf32>
    %cst_71 = arith.constant dense<0.000000e+00> : vector<16xf32>
    %216 = vector.multi_reduction <add>, %215, %cst_71 [1] : vector<16x128xf32> to vector<16xf32>
    %217 = vector.shape_cast %216 : vector<16xf32> to vector<16x1xf32>
    %218 = tpu.reciprocal %217 {approx = true} : vector<16x1xf32> -> vector<16x1xf32>
    %219 = vector.broadcast %218 : vector<16x1xf32> to vector<16x128xf32>
    %220 = arith.mulf %215, %219 : vector<16x128xf32>
    %221 = vector.extract_strided_slice %190 {offsets = [0, 8], sizes = [128, 8], strides = [1, 1]} : vector<128x32xf32> to vector<128x8xf32>
    %cst_72 = arith.constant dense<0.000000e+00> : vector<16x8xf32>
    %222 = tpu.matmul %220, %221, %cst_72 {dimension_numbers = #tpu.dot_dimension_numbers<[1], [0], [0], [1], [0, 0, 1, 1], [], []>} : vector<16x128xf32>, vector<128x8xf32>, vector<16x8xf32> -> vector<16x8xf32>
    %223 = vector.extract_strided_slice %180 {offsets = [0, 16], sizes = [16, 8], strides = [1, 1]} : vector<16x32xf32> to vector<16x8xf32>
    %224 = vector.extract_strided_slice %185 {offsets = [0, 16], sizes = [128, 8], strides = [1, 1]} : vector<128x32xf32> to vector<128x8xf32>
    %cst_73 = arith.constant dense<0.000000e+00> : vector<16x128xf32>
    %225 = tpu.matmul %223, %224, %cst_73 {dimension_numbers = #tpu.dot_dimension_numbers<[1], [1], [0], [0], [0, 0, 1, 0], [], []>} : vector<16x8xf32>, vector<128x8xf32>, vector<16x128xf32> -> vector<16x128xf32>
    %226 = arith.addf %225, %49 : vector<16x128xf32>
    %cst_74 = arith.constant dense<0xFF800000> : vector<16xf32>
    %227 = vector.multi_reduction <maximumf>, %226, %cst_74 [1] : vector<16x128xf32> to vector<16xf32>
    %228 = vector.shape_cast %227 : vector<16xf32> to vector<16x1xf32>
    %229 = vector.broadcast %228 : vector<16x1xf32> to vector<16x128xf32>
    %230 = arith.subf %226, %229 : vector<16x128xf32>
    %231 = math.exp %230 : vector<16x128xf32>
    %cst_75 = arith.constant dense<0.000000e+00> : vector<16xf32>
    %232 = vector.multi_reduction <add>, %231, %cst_75 [1] : vector<16x128xf32> to vector<16xf32>
    %233 = vector.shape_cast %232 : vector<16xf32> to vector<16x1xf32>
    %234 = tpu.reciprocal %233 {approx = true} : vector<16x1xf32> -> vector<16x1xf32>
    %235 = vector.broadcast %234 : vector<16x1xf32> to vector<16x128xf32>
    %236 = arith.mulf %231, %235 : vector<16x128xf32>
    %237 = vector.extract_strided_slice %190 {offsets = [0, 16], sizes = [128, 8], strides = [1, 1]} : vector<128x32xf32> to vector<128x8xf32>
    %cst_76 = arith.constant dense<0.000000e+00> : vector<16x8xf32>
    %238 = tpu.matmul %236, %237, %cst_76 {dimension_numbers = #tpu.dot_dimension_numbers<[1], [0], [0], [1], [0, 0, 1, 1], [], []>} : vector<16x128xf32>, vector<128x8xf32>, vector<16x8xf32> -> vector<16x8xf32>
    %239 = vector.extract_strided_slice %180 {offsets = [0, 24], sizes = [16, 8], strides = [1, 1]} : vector<16x32xf32> to vector<16x8xf32>
    %240 = vector.extract_strided_slice %185 {offsets = [0, 24], sizes = [128, 8], strides = [1, 1]} : vector<128x32xf32> to vector<128x8xf32>
    %cst_77 = arith.constant dense<0.000000e+00> : vector<16x128xf32>
    %241 = tpu.matmul %239, %240, %cst_77 {dimension_numbers = #tpu.dot_dimension_numbers<[1], [1], [0], [0], [0, 0, 1, 0], [], []>} : vector<16x8xf32>, vector<128x8xf32>, vector<16x128xf32> -> vector<16x128xf32>
    %242 = arith.addf %241, %49 : vector<16x128xf32>
    %cst_78 = arith.constant dense<0xFF800000> : vector<16xf32>
    %243 = vector.multi_reduction <maximumf>, %242, %cst_78 [1] : vector<16x128xf32> to vector<16xf32>
    %244 = vector.shape_cast %243 : vector<16xf32> to vector<16x1xf32>
    %245 = vector.broadcast %244 : vector<16x1xf32> to vector<16x128xf32>
    %246 = arith.subf %242, %245 : vector<16x128xf32>
    %247 = math.exp %246 : vector<16x128xf32>
    %cst_79 = arith.constant dense<0.000000e+00> : vector<16xf32>
    %248 = vector.multi_reduction <add>, %247, %cst_79 [1] : vector<16x128xf32> to vector<16xf32>
    %249 = vector.shape_cast %248 : vector<16xf32> to vector<16x1xf32>
    %250 = tpu.reciprocal %249 {approx = true} : vector<16x1xf32> -> vector<16x1xf32>
    %251 = vector.broadcast %250 : vector<16x1xf32> to vector<16x128xf32>
    %252 = arith.mulf %247, %251 : vector<16x128xf32>
    %253 = vector.extract_strided_slice %190 {offsets = [0, 24], sizes = [128, 8], strides = [1, 1]} : vector<128x32xf32> to vector<128x8xf32>
    %cst_80 = arith.constant dense<0.000000e+00> : vector<16x8xf32>
    %254 = tpu.matmul %252, %253, %cst_80 {dimension_numbers = #tpu.dot_dimension_numbers<[1], [0], [0], [1], [0, 0, 1, 1], [], []>} : vector<16x128xf32>, vector<128x8xf32>, vector<16x8xf32> -> vector<16x8xf32>
    %255 = tpu.concatenate %206, %222, %238, %254 in 1 : vector<16x8xf32>, vector<16x8xf32>, vector<16x8xf32>, vector<16x8xf32> -> vector<16x32xf32>
    %c96 = arith.constant 96 : index
    %c0_81 = arith.constant 0 : index
    %256 = vector.load %arg6[%c96, %c0_81] : memref<320x128xf32, #tpu.memory_space<vmem>>, vector<32x32xf32>
    %cst_82 = arith.constant dense<0.000000e+00> : vector<16x32xf32>
    %257 = tpu.matmul %255, %256, %cst_82 {dimension_numbers = #tpu.dot_dimension_numbers<[1], [0], [0], [1], [0, 0, 1, 1], [], []>} : vector<16x32xf32>, vector<32x32xf32>, vector<16x32xf32> -> vector<16x32xf32>
    %c248 = arith.constant 248 : index
    %c0_83 = arith.constant 0 : index
    %258 = vector.load %arg6[%c248, %c0_83] : memref<320x128xf32, #tpu.memory_space<vmem>>, vector<1x32xf32>
    %259 = vector.broadcast %258 : vector<1x32xf32> to vector<16x32xf32>
    %260 = arith.addf %257, %259 : vector<16x32xf32>
    %261 = arith.addf %165, %260 : vector<16x32xf32>
    %cst_84 = arith.constant dense<0.000000e+00> : vector<16xf32>
    %262 = vector.multi_reduction <add>, %261, %cst_84 [1] : vector<16x32xf32> to vector<16xf32>
    %263 = vector.shape_cast %262 : vector<16xf32> to vector<16x1xf32>
    %cst_85 = arith.constant 3.200000e+01 : f32
    %264 = vector.broadcast %cst_85 : f32 to vector<16x1xf32>
    %265 = arith.divf %263, %264 : vector<16x1xf32>
    %266 = vector.broadcast %265 : vector<16x1xf32> to vector<16x32xf32>
    %267 = arith.subf %261, %266 : vector<16x32xf32>
    %268 = arith.mulf %267, %267 : vector<16x32xf32>
    %cst_86 = arith.constant dense<0.000000e+00> : vector<16xf32>
    %269 = vector.multi_reduction <add>, %268, %cst_86 [1] : vector<16x32xf32> to vector<16xf32>
    %270 = vector.shape_cast %269 : vector<16xf32> to vector<16x1xf32>
    %cst_87 = arith.constant 3.200000e+01 : f32
    %271 = vector.broadcast %cst_87 : f32 to vector<16x1xf32>
    %272 = arith.divf %270, %271 : vector<16x1xf32>
    %273 = vector.broadcast %265 : vector<16x1xf32> to vector<16x32xf32>
    %274 = arith.subf %261, %273 : vector<16x32xf32>
    %cst_88 = arith.constant 9.99999974E-6 : f32
    %275 = vector.broadcast %cst_88 : f32 to vector<16x1xf32>
    %276 = arith.addf %272, %275 : vector<16x1xf32>
    %277 = math.rsqrt %276 : vector<16x1xf32>
    %278 = vector.broadcast %277 : vector<16x1xf32> to vector<16x32xf32>
    %279 = arith.mulf %274, %278 : vector<16x32xf32>
    %c288 = arith.constant 288 : index
    %c0_89 = arith.constant 0 : index
    %280 = vector.load %arg6[%c288, %c0_89] : memref<320x128xf32, #tpu.memory_space<vmem>>, vector<1x32xf32>
    %281 = vector.broadcast %280 : vector<1x32xf32> to vector<16x32xf32>
    %282 = arith.mulf %279, %281 : vector<16x32xf32>
    %c296 = arith.constant 296 : index
    %c0_90 = arith.constant 0 : index
    %283 = vector.load %arg6[%c296, %c0_90] : memref<320x128xf32, #tpu.memory_space<vmem>>, vector<1x32xf32>
    %284 = vector.broadcast %283 : vector<1x32xf32> to vector<16x32xf32>
    %285 = arith.addf %282, %284 : vector<16x32xf32>
    %c128 = arith.constant 128 : index
    %c0_91 = arith.constant 0 : index
    %286 = vector.load %arg6[%c128, %c0_91] : memref<320x128xf32, #tpu.memory_space<vmem>>, vector<32x64xf32>
    %cst_92 = arith.constant dense<0.000000e+00> : vector<16x64xf32>
    %287 = tpu.matmul %285, %286, %cst_92 {dimension_numbers = #tpu.dot_dimension_numbers<[1], [0], [0], [1], [0, 0, 1, 1], [], []>} : vector<16x32xf32>, vector<32x64xf32>, vector<16x64xf32> -> vector<16x64xf32>
    %c256 = arith.constant 256 : index
    %c0_93 = arith.constant 0 : index
    %288 = vector.load %arg6[%c256, %c0_93] : memref<320x128xf32, #tpu.memory_space<vmem>>, vector<1x64xf32>
    %289 = vector.broadcast %288 : vector<1x64xf32> to vector<16x64xf32>
    %290 = arith.addf %287, %289 : vector<16x64xf32>
    %cst_94 = arith.constant 0.000000e+00 : f32
    %291 = vector.broadcast %cst_94 : f32 to vector<16x64xf32>
    %292 = arith.maximumf %290, %291 : vector<16x64xf32>
    %c160 = arith.constant 160 : index
    %c0_95 = arith.constant 0 : index
    %293 = vector.load %arg6[%c160, %c0_95] : memref<320x128xf32, #tpu.memory_space<vmem>>, vector<64x32xf32>
    %cst_96 = arith.constant dense<0.000000e+00> : vector<16x32xf32>
    %294 = tpu.matmul %292, %293, %cst_96 {dimension_numbers = #tpu.dot_dimension_numbers<[1], [0], [0], [1], [0, 0, 1, 1], [], []>} : vector<16x64xf32>, vector<64x32xf32>, vector<16x32xf32> -> vector<16x32xf32>
    %c264 = arith.constant 264 : index
    %c0_97 = arith.constant 0 : index
    %295 = vector.load %arg6[%c264, %c0_97] : memref<320x128xf32, #tpu.memory_space<vmem>>, vector<1x32xf32>
    %296 = vector.broadcast %295 : vector<1x32xf32> to vector<16x32xf32>
    %297 = arith.addf %294, %296 : vector<16x32xf32>
    %298 = arith.addf %285, %297 : vector<16x32xf32>
    %cst_98 = arith.constant dense<0.000000e+00> : vector<16xf32>
    %299 = vector.multi_reduction <add>, %298, %cst_98 [1] : vector<16x32xf32> to vector<16xf32>
    %300 = vector.shape_cast %299 : vector<16xf32> to vector<16x1xf32>
    %cst_99 = arith.constant 3.200000e+01 : f32
    %301 = vector.broadcast %cst_99 : f32 to vector<16x1xf32>
    %302 = arith.divf %300, %301 : vector<16x1xf32>
    %303 = vector.broadcast %302 : vector<16x1xf32> to vector<16x32xf32>
    %304 = arith.subf %298, %303 : vector<16x32xf32>
    %305 = arith.mulf %304, %304 : vector<16x32xf32>
    %cst_100 = arith.constant dense<0.000000e+00> : vector<16xf32>
    %306 = vector.multi_reduction <add>, %305, %cst_100 [1] : vector<16x32xf32> to vector<16xf32>
    %307 = vector.shape_cast %306 : vector<16xf32> to vector<16x1xf32>
    %cst_101 = arith.constant 3.200000e+01 : f32
    %308 = vector.broadcast %cst_101 : f32 to vector<16x1xf32>
    %309 = arith.divf %307, %308 : vector<16x1xf32>
    %310 = vector.broadcast %302 : vector<16x1xf32> to vector<16x32xf32>
    %311 = arith.subf %298, %310 : vector<16x32xf32>
    %cst_102 = arith.constant 9.99999974E-6 : f32
    %312 = vector.broadcast %cst_102 : f32 to vector<16x1xf32>
    %313 = arith.addf %309, %312 : vector<16x1xf32>
    %314 = math.rsqrt %313 : vector<16x1xf32>
    %315 = vector.broadcast %314 : vector<16x1xf32> to vector<16x32xf32>
    %316 = arith.mulf %311, %315 : vector<16x32xf32>
    %c304 = arith.constant 304 : index
    %c0_103 = arith.constant 0 : index
    %317 = vector.load %arg6[%c304, %c0_103] : memref<320x128xf32, #tpu.memory_space<vmem>>, vector<1x32xf32>
    %318 = vector.broadcast %317 : vector<1x32xf32> to vector<16x32xf32>
    %319 = arith.mulf %316, %318 : vector<16x32xf32>
    %c312 = arith.constant 312 : index
    %c0_104 = arith.constant 0 : index
    %320 = vector.load %arg6[%c312, %c0_104] : memref<320x128xf32, #tpu.memory_space<vmem>>, vector<1x32xf32>
    %321 = vector.broadcast %320 : vector<1x32xf32> to vector<16x32xf32>
    %322 = arith.addf %319, %321 : vector<16x32xf32>
    %c0_105 = arith.constant 0 : index
    %c0_106 = arith.constant 0 : index
    %323 = vector.load %arg7[%c0_105, %c0_106] : memref<16x32xf32, #tpu.memory_space<vmem>>, vector<16x32xf32>
    tpu.vector_store %arg7[%c0_105, %c0_106], %322 {strides = array<i32>} : memref<16x32xf32, #tpu.memory_space<vmem>>, vector<16x32xf32>,
    return
  }
}

</mosaic_0001>

<bundles_post_ra>
// kernel: time_decoder_layer.1
= control target key start
LH: loop header
LB: loop body
LE: loop exit
PB: predicated region body
PF: predicated region fallthrough
CT: control target
= control target key end

     0   :  { %14 = vsyncpa [#allocation3], 0  ;;  %s5487_s0 = inlined_call_operand.vmem [shape: f32[16,32], index: 0, kind: input, shape index: {}]   ;;  %s5488_s1 = inlined_call_operand.vmem [shape: f32[16,32], index: 1, kind: input, shape index: {}]   ;;  %s5489_s2 = inlined_call_operand.hbm [shape: f32[128,32], index: 2, kind: input, shape index: {}]   ;;  %s5490_s3 = inlined_call_operand.hbm [shape: f32[128,32], index: 3, kind: input, shape index: {}]   ;;  %s5491_s4 = inlined_call_operand.vmem [shape: f32[1,16], index: 4, kind: input, shape index: {}]   ;;  %s5492_s5 = inlined_call_operand.vmem [shape: f32[1,128], index: 5, kind: input, shape index: {}]   ;;  %s5493_s6 = inlined_call_operand.hbm [shape: f32[320,128], index: 6, kind: input, shape index: {}]   ;;  %s5494_s7 = inlined_call_operand.hbm [shape: f32[16,32], index: 7, kind: output, shape index: {0}]   ;;  %s5495_s8 = inlined_call_operand.vmem [shape: f32[16,16], index: 8, kind: output, shape index: {1}]  }
   0x1   :  { %15 = vsyncpa [#allocation6], 0 }
   0x2   :  { %16 = vsyncpa [#allocation4], 0  ;;  %s4457_s27 = smov [#allocation5]   ;;  %s4458_s29 = smov [#allocation2]  }
   0x3   :  { %s38_s28 = sshll.u32 %s4457_s27, 4  ;;  %s26_s30 = sshll.u32 %s4458_s29, 4  ;;  %s39_s28 = int_to_ptr.vmem [resolvable:$true] %s38_s28  ;;  %s27_s30 = int_to_ptr.vmem [resolvable:$true] %s26_s30 }
   0x4   :  { %s4379_s9 = scalar_lea.vmem %s39_s28, 2048  ;;  %p4384_p1 = scmp.lt.s32.totalorder %s39_s28, %s39_s28 }
   0x5   :  { %p4380_p0 = scmp.ne.s32.totalorder %s39_s28, %s4379_s9  ;;  %p4385_p2 = scmp.lt.s32.totalorder %s4379_s9, %s4379_s9 }
   0x7   :  { %p4386_p3 = por %p4385_p2, %p4384_p1 }
   0x9   :  { %p4387_p4 = pnand %p4386_p3, %p4380_p0 }
   0xb   :  { %4390 = shalt.err (!%p4387_p4)
}
   0xc   :  { %s4459_s10 = smov 128   ;;  %s4460_s11 = smov 8  }
   0xd   :  { %44 = dma.hbm_to_vmem [thread:$0]  %s5490_s3, 2048, %s39_s28, [#allocation6], %s4459_s10, %s4459_s10, %s4460_s11  }
   0xe   :  { %s4399_s14 = scalar_lea.vmem %s27_s30, 2048  ;;  %p4404_p6 = scmp.lt.s32.totalorder %s27_s30, %s27_s30 }
   0xf   :  { %p4400_p5 = scmp.ne.s32.totalorder %s27_s30, %s4399_s14  ;;  %p4405_p7 = scmp.lt.s32.totalorder %s4399_s14, %s4399_s14 }
  0x11   :  { %p4406_p8 = por %p4405_p7, %p4404_p6 }
  0x13   :  { %p4407_p9 = pnand %p4406_p8, %p4400_p5 }
  0x15   :  { %4410 = shalt.err (!%p4407_p9)
}
  0x16   :  { %32 = dma.hbm_to_vmem [thread:$0]  %s5489_s2, 2048, %s27_s30, [#allocation3], %s4459_s10, %s4459_s10, %s4460_s11  }
  0x17   :  { %s4461_s17 = smov [#allocation7]  }
  0x18   :  { %s54_s18 = sshll.u32 %s4461_s17, 4  ;;  %s55_s18 = int_to_ptr.vmem [resolvable:$true] %s54_s18 }
  0x19   :  { %s4419_s19 = scalar_lea.vmem %s55_s18, 5120  ;;  %p4424_p11 = scmp.lt.s32.totalorder %s55_s18, %s55_s18 }
  0x1a   :  { %p4420_p10 = scmp.ne.s32.totalorder %s55_s18, %s4419_s19  ;;  %p4425_p12 = scmp.lt.s32.totalorder %s4419_s19, %s4419_s19 }
  0x1c   :  { %p4426_p13 = por %p4425_p12, %p4424_p11 }
  0x1e   :  { %p4427_p0 = pnand %p4426_p13, %p4420_p10 }
  0x20   :  { %4430 = shalt.err (!%p4427_p0)
}
  0x21   :  { %60 = dma.hbm_to_vmem [thread:$0]  %s5493_s6, 5120, %s55_s18, [#allocation6], %s4459_s10, %s4459_s10, %s4460_s11  }
  0x22   :  { %4451 = dma.done.wait [#allocation3], 2048  }
  0x23   :  { %4452 = vsyncadd [#allocation3], 4294965248 }
  0x24   :  { %4453 = dma.done.wait [#allocation6], 7168  }
  0x25   :  { %4454 = vsyncadd [#allocation6], 4294960128  ;;  %v133_v0 = vld [vmem:[#allocation7 + $0x18] sm:$0xff]  ;;  %v132_v1 = vld [vmem:[#allocation7 + $0x10] sm:$0xff]  ;;  %vm139_vm0 = vcmask 261120   ;;  %vm330_vm1 = vcmask 64512   ;;  %v76_v23 = vlaneseq }
  0x26   :  { %3792 = vmatprep.subr.mxu1 %v133_v0  ;;  %v4541_v2 = vld [vmem:[%s5487_s0] sm:$0xff]  ;;  %v131_v4 = vld [vmem:[#allocation7 + $0x8] sm:$0xff]  ;;  %v4464_v40 = vmov 0   ;;  %v4465_v47 = vmov -1e+30   ;;  %vm416_vm8 = vcmask 130048  }
  0x27   :  { %v72_v3 = vld [vmem:[%s5488_s1] sm:$0xff]  ;;  %3793 = vmatpush3.msra.mxu1 %v133_v0  ;;  %v4550_v6 = vld [vmem:[%s5487_s0 + $0x8] sm:$0xff]  ;;  %s4462_s0 = smov 64   ;;  %v4592_v24 = vshrl.u32 %v76_v23, 7  ;;  %v82_v26 = vand.u32 127, %v76_v23  ;;  %s4467_s29 = smov 120  }
  0x28   :  { %v74_v5 = vadd.f32 %v72_v3, %v4541_v2  ;;  %v73_v7 = vld [vmem:[%s5488_s1 + $0x8] sm:$0xff]  ;;  %3794 = vmatprep.subr.mxu1 %v132_v1  ;;  %v130_v8 = vld [vmem:[#allocation7] sm:$0xff]  ;;  %233 = vrot.lane.b32.xlu1 %v133_v0, %s4462_s0  ;;  %s4463_s1 = smov 96   ;;  %s4468_s30 = smov 80   ;;  %vm1158_vm9 = vcmask 195584  }
  0x29   :  { %3795 = vmatpush3.msra.mxu1 %v132_v1  ;;  %v75_v9 = vadd.f32 %v73_v7, %v4550_v6  ;;  %v4560_v10 = vld [vmem:[#allocation7 + $0xe0] ss:$0 sm:$0xff]  ;;  %v78_v25 = vadd.s32 8, %v4592_v24  ;;  %v4595_v28 = vcvt.s32.f32 %v82_v26  ;;  %v79_v29 = vcvt.s32.f32 %v4592_v24  ;;  %s4469_s9 = smov 112   ;;  %s4470_s12 = smov 72  }
  0x2a   :  { %3800 = vmatprep.mubr.msk.f32.mxu1 %vm139_vm0, %v74_v5  ;;  %3796 = vmatprep.subr.mxu1 %v131_v4  ;;  %v99_v33 = vld [vmem:[%s5491_s4] sm:$0x1]  ;;  %v104_v39 = vsub.s32 0, %v4592_v24  ;;  %s4466_s4 = smov 88   ;;  %s4471_s13 = smov 104  }
  0x2b   :  { %3797 = vmatpush3.msra.mxu1 %v131_v4  ;;  %v80_v27 = vcvt.s32.f32 %v78_v25  ;;  %v93_v31 = vmul.f32 0.5, %v4595_v28  ;;  %v4601_v32 = vmul.f32 0.5, %v79_v29  ;;  %vm100_vm2 = vcmp.lt.f32.partialorder %v99_v33, 0.5  ;;  %s4472_s14 = smov 16  }
  0x2c   :  { %3798 = vmatprep.subr.mxu1 %v130_v8  ;;  %231 = vrot.lane.b32.xlu1 %v132_v1, %s4462_s0  ;;  %v101_v41 = vsel %vm100_vm2, 1, %v4464_v40 }
  0x2d   :  { %3799 = vmatpush3.msra.mxu1 %v130_v8  ;;  %v4598_v30 = vmul.f32 0.5, %v80_v27  ;;  %v94_v35 = vfloor.f32 %v93_v31  ;;  %v87_v36 = vfloor.f32 %v4601_v32  ;;  %v105_v45 = vrot.slane %v101_v41, %v104_v39 }
  0x2e   :  { %3801 = vmatmul.mubr.msk.f32.vlgmr.msra.gmra.mxu1 %vm139_vm0, %v75_v9 }
  0x2f   :  { %3811 = vmatprep.mubr.msk.f32.mxu1 %vm139_vm0, %v4541_v2  ;;  %v88_v34 = vfloor.f32 %v4598_v30  ;;  %v95_v38 = vmul.f32 2.0, %v94_v35  ;;  %v89_v42 = vmul.f32 2.0, %v87_v36  ;;  %vm106_vm4 = vcmp.eq.s32.totalorder %v105_v45, 1 }
  0x30   :  { %227 = vrot.lane.b32.xlu1 %v130_v8, %s4462_s0 }
  0x31   :  { %v90_v37 = vmul.f32 2.0, %v88_v34  ;;  %v96_v44 = vsub.f32 %v4595_v28, %v95_v38  ;;  %v91_v46 = vsub.f32 %v79_v29, %v89_v42 }
  0x33   :  { %v92_v43 = vsub.f32 %v80_v27, %v90_v37  ;;  %vm97_vm5 = vcmp.eq.f32.partialorder %v91_v46, %v96_v44 }
  0x34   :  { %vm107_vm7 = vmand %vm97_vm5, %vm106_vm4 }
  0x35   :  { %vm98_vm3 = vcmp.eq.f32.partialorder %v92_v43, %v96_v44  ;;  %v4621_v50 = vsel %vm107_vm7, 0.0, %v4465_v47 }
  0x36   :  { %vm108_vm6 = vmand %vm98_vm3, %vm106_vm4 }
  0x37   :  { %v4618_v48 = vsel %vm108_vm6, 0.0, %v4465_v47 }
  0x9a   :  { %v234_v19 = vpop.permute.xlu1 %233 }
  0x9b   :  { %3803 = vmatprep.subr.mxu1 %v234_v19 }
  0x9c   :  { %3804 = vmatpush3.msra.mxu1 %v234_v19 }
  0x9e   :  { %v232_v20 = vpop.permute.xlu1 %231 }
  0x9f   :  { %3805 = vmatprep.subr.mxu1 %v232_v20 }
  0xa0   :  { %3806 = vmatpush3.msra.mxu1 %v232_v20 }
  0xa2   :  { %v228_v22 = vpop.permute.xlu1 %227 }
  0xee   :  { %v3802_v11 = vpop.f32.mrf.mxu1 }
  0xef   :  { %v4564_v12 = vadd.f32 %v3802_v11, %v4560_v10 }
  0xf0   :  { %v212_v13 = vpop.f32.mrf.mxu1 }
  0xf1   :  { %v4567_v14 = vadd.f32 %v4560_v10, %v212_v13  ;;  %328 = vrot.lane.b32.xlu0 %v4564_v12, %s4463_s1  ;;  %v4586_v18 = vmul.f32 0.35355338, %v4564_v12 }
  0xf3   :  { %v4573_v15 = vmul.f32 0.35355338, %v4567_v14 }
  0xf5   :  { %326 = vrot.lane.b32.xlu0 %v4567_v14, %s4463_s1  ;;  %3818 = vmatprep.mubr.msk.f32.mxu0 %vm330_vm1, %v4573_v15 }
  0xf9   :  { %229 = vrot.lane.b32.xlu0 %v131_v4, %s4462_s0 }
 0x163   :  { %v329_v16 = vpop.permute.xlu0 %328 }
 0x164   :  { %3814 = vmatprep.subr.msk.mxu0 %vm330_vm1, %v329_v16 }
 0x165   :  { %3815 = vmatpush3.xpose.msk.msra.mxu0 %vm330_vm1, %v329_v16 }
 0x167   :  { %v327_v17 = vpop.permute.xlu0 %326 }
 0x168   :  { %3816 = vmatprep.subr.msk.mxu0 %vm330_vm1, %v327_v17 }
 0x169   :  { %3817 = vmatpush3.xpose.msk.msra.mxu0 %vm330_vm1, %v327_v17 }
 0x16b   :  { %v230_v21 = vpop.permute.xlu0 %229 }
 0x16c   :  { %3819 = vmatmul.mubr.msk.f32.vlgmr.msra.gmra.mxu0 %vm330_vm1, %v4586_v18  ;;  %3807 = vmatprep.subr.mxu1 %v230_v21 }
 0x16d   :  { %3808 = vmatpush3.msra.mxu1 %v230_v21 }
 0x16e   :  { %3809 = vmatprep.subr.mxu1 %v228_v22 }
 0x16f   :  { %3810 = vmatpush3.msra.mxu1 %v228_v22 }
 0x170   :  { %3812 = vmatmul.mubr.msk.f32.vlgmr.msra.gmra.mxu1 %vm139_vm0, %v4550_v6 }
 0x22c   :  { %v3820_v49 = vpop.f32.mrf.mxu0 }
 0x22d   :  { %v413_v51 = vadd.f32 %v3820_v49, %v4618_v48 }
 0x22e   :  { %v407_v52 = vpop.f32.mrf.mxu0 }
 0x22f   :  { %v408_v53 = vadd.f32 %v407_v52, %v4621_v50  ;;  %v420_v54 = vsel %vm416_vm8, %v413_v51, -inf }
 0x230   :  { %421 = vmax.xlane.f32.xlu1 %v420_v54  ;;  %v3813_v4 = vpop.f32.mrf.mxu1 }
 0x231   :  { %v417_v55 = vsel %vm416_vm8, %v408_v53, -inf }
 0x232   :  { %418 = vmax.xlane.f32.xlu0 %v417_v55  ;;  %v315_v7 = vpop.f32.mrf.mxu1 }
 0x241   :  { %240 = vrot.lane.b32.xlu1 %v4560_v10, %s4462_s0 }
 0x245   :  { %526 = vrot.lane.b32.xlu1 %v4567_v14, %s4466_s4 }
 0x249   :  { %522 = vrot.lane.b32.xlu1 %v4573_v15, %s4467_s29 }
 0x2b9   :  { %v422_v56 = vpop.xlane.xlu1 %421 }
 0x2ba   :  { %v424_v57 = vsub.f32 %v413_v51, %v422_v56 }
 0x2bb   :  { %v419_v58 = vpop.xlane.xlu0 %418 }
 0x2bc   :  { %v427_v59 = vmul.f32 1.442695, %v424_v57  ;;  %v423_v60 = vsub.f32 %v408_v53, %v419_v58 }
 0x2bd   :  { %v241_v3 = vpop.permute.xlu1 %240 }
 0x2be   :  { %4295 = vpow2.f32 %v427_v59  ;;  %v425_v61 = vmul.f32 1.442695, %v423_v60  ;;  %v4634_v5 = vadd.f32 %v3813_v4, %v241_v3  ;;  %v4636_v8 = vadd.f32 %v315_v7, %v241_v3 }
 0x2c0   :  { %4297 = vpow2.f32 %v425_v61  ;;  %3821 = vmatprep.subr.mxu1 %v4634_v5 }
 0x2c1   :  { %3822 = vmatpush3.msra.mxu1 %v4634_v5  ;;  %v527_v13 = vpop.permute.xlu1 %526 }
 0x2c2   :  { %3823 = vmatprep.subr.mxu1 %v4636_v8 }
 0x2c3   :  { %3824 = vmatpush3.msra.mxu1 %v4636_v8 }
 0x2c5   :  { %v523_v21 = vpop.permute.xlu1 %522 }
 0x2cb   :  { %v4296_v62 = vpop.eup %4295 }
 0x2cc   :  { %v432_v63 = vsel %vm416_vm8, %v4296_v62, 0.0 }
 0x2cd   :  { %v4298_v0 = vpop.eup %4297  ;;  %433 = vadd.xlane.f32.xlu0 %v432_v63 }
 0x2ce   :  { %v429_v1 = vsel %vm416_vm8, %v4298_v0, 0.0 }
 0x2d1   :  { %430 = vadd.xlane.f32.xlu0 %v429_v1 }
 0x2e7   :  { %528 = vrot.lane.b32.xlu0 %v4564_v12, %s4466_s4 }
 0x2eb   :  { %524 = vrot.lane.b32.xlu0 %v4586_v18, %s4467_s29 }
 0x356   :  { %v434_v9 = vpop.xlane.xlu0 %433 }
 0x357   :  { %4299 = vrcp.f32 %v434_v9 }
 0x35a   :  { %v431_v10 = vpop.xlane.xlu0 %430 }
 0x35b   :  { %4301 = vrcp.f32 %v431_v10 }
 0x35e   :  { %v529_v11 = vpop.permute.xlu0 %528 }
 0x35f   :  { %3828 = vmatprep.subr.msk.mxu1 %vm330_vm1, %v529_v11 }
 0x362   :  { %v525_v22 = vpop.permute.xlu0 %524 }
 0x364   :  { %v4300_v16 = vpop.eup %4299 }
 0x365   :  { %v4648_v20 = vmul.f32 %v4300_v16, %v4296_v62 }
 0x368   :  { %v4302_v17 = vpop.eup %4301 }
 0x369   :  { %v4646_v19 = vmul.f32 %v4302_v17, %v4298_v0 }
 0x36b   :  { %3825 = vmatprep.mubr.msk.f32.mxu1 %vm416_vm8, %v4646_v19 }
 0x36c   :  { %3826 = vmatmul.mubr.msk.f32.vlgmr.msra.gmra.mxu1 %vm416_vm8, %v4648_v20 }
 0x36d   :  { %3829 = vmatpush3.xpose.msk.msra.mxu1 %vm330_vm1, %v529_v11  ;;  %3832 = vmatprep.mubr.msk.f32.mxu1 %vm330_vm1, %v523_v21 }
 0x36e   :  { %3830 = vmatprep.subr.msk.mxu1 %vm330_vm1, %v527_v13 }
 0x371   :  { %3831 = vmatpush3.xpose.msk.msra.mxu1 %vm330_vm1, %v527_v13 }
 0x374   :  { %3833 = vmatmul.mubr.msk.f32.vlgmr.msra.gmra.mxu1 %vm330_vm1, %v525_v22 }
 0x42c   :  { %v4659_v23 = vpop.f32.mrf.mxu1 }
 0x42e   :  { %v4661_v25 = vpop.f32.mrf.mxu1 }
 0x434   :  { %v3834_v26 = vpop.f32.mrf.mxu1 }
 0x435   :  { %v610_v27 = vadd.f32 %v3834_v26, %v4618_v48 }
 0x436   :  { %v604_v29 = vpop.f32.mrf.mxu1 }
 0x437   :  { %v605_v31 = vadd.f32 %v604_v29, %v4621_v50  ;;  %v616_v33 = vsel %vm416_vm8, %v610_v27, -inf }
 0x438   :  { %617 = vmax.xlane.f32.xlu0 %v616_v33 }
 0x439   :  { %v613_v35 = vsel %vm416_vm8, %v605_v31, -inf }
 0x43a   :  { %614 = vmax.xlane.f32.xlu1 %v613_v35 }
 0x4c1   :  { %v618_v37 = vpop.xlane.xlu0 %617 }
 0x4c2   :  { %v620_v38 = vsub.f32 %v610_v27, %v618_v37 }
 0x4c3   :  { %v615_v41 = vpop.xlane.xlu1 %614 }
 0x4c4   :  { %v623_v42 = vmul.f32 1.442695, %v620_v38  ;;  %v619_v43 = vsub.f32 %v605_v31, %v615_v41 }
 0x4c6   :  { %4303 = vpow2.f32 %v623_v42  ;;  %v621_v44 = vmul.f32 1.442695, %v619_v43 }
 0x4c8   :  { %4305 = vpow2.f32 %v621_v44 }
 0x4d3   :  { %v4304_v45 = vpop.eup %4303 }
 0x4d4   :  { %v628_v46 = vsel %vm416_vm8, %v4304_v45, 0.0 }
 0x4d5   :  { %v4306_v49 = vpop.eup %4305  ;;  %629 = vadd.xlane.f32.xlu1 %v628_v46 }
 0x4d6   :  { %v625_v51 = vsel %vm416_vm8, %v4306_v49, 0.0 }
 0x4d7   :  { %626 = vadd.xlane.f32.xlu0 %v625_v51 }
 0x4e6   :  { %639 = vrot.lane.b32.xlu1 %v4636_v8, %s4467_s29 }
 0x4ea   :  { %732 = vrot.lane.b32.xlu1 %v4564_v12, %s4468_s30 }
 0x4ed   :  { %641 = vrot.lane.b32.xlu0 %v4634_v5, %s4467_s29 }
 0x4ee   :  { %726 = vrot.lane.b32.xlu1 %v4573_v15, %s4469_s9 }
 0x4f1   :  { %730 = vrot.lane.b32.xlu0 %v4567_v14, %s4468_s30 }
 0x4f5   :  { %728 = vrot.lane.b32.xlu0 %v4586_v18, %s4469_s9 }
 0x55e   :  { %v630_v52 = vpop.xlane.xlu1 %629 }
 0x55f   :  { %4307 = vrcp.f32 %v630_v52 }
 0x560   :  { %v627_v53 = vpop.xlane.xlu0 %626 }
 0x561   :  { %4309 = vrcp.f32 %v627_v53 }
 0x562   :  { %v640_v54 = vpop.permute.xlu1 %639 }
 0x564   :  { %v642_v55 = vpop.permute.xlu0 %641 }
 0x565   :  { %3835 = vmatprep.subr.mxu0 %v642_v55 }
 0x566   :  { %3836 = vmatpush3.msra.mxu0 %v642_v55  ;;  %v733_v56 = vpop.permute.xlu1 %732 }
 0x567   :  { %3837 = vmatprep.subr.mxu0 %v640_v54 }
 0x568   :  { %3838 = vmatpush3.msra.mxu0 %v640_v54  ;;  %v731_v62 = vpop.permute.xlu0 %730 }
 0x569   :  { %3842 = vmatprep.subr.msk.mxu0 %vm330_vm1, %v733_v56 }
 0x56a   :  { %v727_v61 = vpop.permute.xlu1 %726 }
 0x56c   :  { %v4308_v57 = vpop.eup %4307  ;;  %v729_v63 = vpop.permute.xlu0 %728 }
 0x56d   :  { %v634_v60 = vmul.f32 %v4308_v57, %v4304_v45 }
 0x56e   :  { %v4310_v58 = vpop.eup %4309 }
 0x56f   :  { %v633_v59 = vmul.f32 %v4310_v58, %v4306_v49 }
 0x571   :  { %3839 = vmatprep.mubr.msk.f32.mxu0 %vm416_vm8, %v633_v59 }
 0x572   :  { %3840 = vmatmul.mubr.msk.f32.vlgmr.msra.gmra.mxu0 %vm416_vm8, %v634_v60 }
 0x573   :  { %3843 = vmatpush3.xpose.msk.msra.mxu0 %vm330_vm1, %v733_v56  ;;  %3846 = vmatprep.mubr.msk.f32.mxu0 %vm330_vm1, %v727_v61 }
 0x574   :  { %3844 = vmatprep.subr.msk.mxu0 %vm330_vm1, %v731_v62 }
 0x577   :  { %3845 = vmatpush3.xpose.msk.msra.mxu0 %vm330_vm1, %v731_v62 }
 0x57a   :  { %3847 = vmatmul.mubr.msk.f32.vlgmr.msra.gmra.mxu0 %vm330_vm1, %v729_v63 }
 0x632   :  { %v4687_v0 = vpop.f32.mrf.mxu0 }
 0x634   :  { %v4689_v1 = vpop.f32.mrf.mxu0 }
 0x63a   :  { %v3848_v3 = vpop.f32.mrf.mxu0 }
 0x63b   :  { %v814_v4 = vadd.f32 %v3848_v3, %v4618_v48 }
 0x63c   :  { %v808_v7 = vpop.f32.mrf.mxu0 }
 0x63d   :  { %v809_v9 = vadd.f32 %v808_v7, %v4621_v50  ;;  %v820_v10 = vsel %vm416_vm8, %v814_v4, -inf }
 0x63e   :  { %821 = vmax.xlane.f32.xlu0 %v820_v10 }
 0x63f   :  { %v817_v11 = vsel %vm416_vm8, %v809_v9, -inf }
 0x640   :  { %818 = vmax.xlane.f32.xlu1 %v817_v11 }
 0x6c7   :  { %v822_v13 = vpop.xlane.xlu0 %821 }
 0x6c8   :  { %v824_v16 = vsub.f32 %v814_v4, %v822_v13 }
 0x6c9   :  { %v819_v17 = vpop.xlane.xlu1 %818 }
 0x6ca   :  { %v827_v21 = vmul.f32 1.442695, %v824_v16  ;;  %v823_v22 = vsub.f32 %v809_v9, %v819_v17 }
 0x6cc   :  { %4311 = vpow2.f32 %v827_v21  ;;  %v825_v26 = vmul.f32 1.442695, %v823_v22 }
 0x6ce   :  { %4313 = vpow2.f32 %v825_v26  ;;  %v1164_v26 = vld [vmem:[#allocation7 + $0x38] sm:$0xff] }
 0x6d9   :  { %v4312_v27 = vpop.eup %4311 }
 0x6da   :  { %v832_v29 = vsel %vm416_vm8, %v4312_v27, 0.0 }
 0x6db   :  { %v4314_v31 = vpop.eup %4313  ;;  %833 = vadd.xlane.f32.xlu1 %v832_v29  ;;  %v1162_v29 = vld [vmem:[#allocation7 + $0x28] sm:$0xff] }
 0x6dc   :  { %v829_v33 = vsel %vm416_vm8, %v4314_v31, 0.0 }
 0x6dd   :  { %830 = vadd.xlane.f32.xlu0 %v829_v33  ;;  %v4743_v33 = vld [vmem:[#allocation7 + $0x58] sm:$0xff] }
 0x6ec   :  { %841 = vrot.lane.b32.xlu1 %v4636_v8, %s4469_s9 }
 0x6f0   :  { %934 = vrot.lane.b32.xlu1 %v4564_v12, %s4470_s12 }
 0x6f3   :  { %843 = vrot.lane.b32.xlu0 %v4634_v5, %s4469_s9 }
 0x6f4   :  { %928 = vrot.lane.b32.xlu1 %v4573_v15, %s4471_s13  ;;  %v636_v15 = vadd.f32 %v634_v60, %v4648_v20 }
 0x6f7   :  { %932 = vrot.lane.b32.xlu0 %v4567_v14, %s4470_s12 }
 0x6fb   :  { %930 = vrot.lane.b32.xlu0 %v4586_v18, %s4471_s13  ;;  %v635_v18 = vadd.f32 %v633_v59, %v4646_v19 }
 0x764   :  { %v834_v35 = vpop.xlane.xlu1 %833 }
 0x765   :  { %4315 = vrcp.f32 %v834_v35  ;;  %v4746_v35 = vld [vmem:[#allocation7 + $0x50] sm:$0xff] }
 0x766   :  { %v831_v37 = vpop.xlane.xlu0 %830 }
 0x767   :  { %4317 = vrcp.f32 %v831_v37 }
 0x768   :  { %v842_v38 = vpop.permute.xlu1 %841 }
 0x76a   :  { %v844_v41 = vpop.permute.xlu0 %843 }
 0x76b   :  { %3849 = vmatprep.subr.mxu1 %v844_v41 }
 0x76c   :  { %3850 = vmatpush3.msra.mxu1 %v844_v41  ;;  %v935_v12 = vpop.permute.xlu1 %934 }
 0x76d   :  { %3851 = vmatprep.subr.mxu1 %v842_v38 }
 0x76e   :  { %3852 = vmatpush3.msra.mxu1 %v842_v38  ;;  %v933_v51 = vpop.permute.xlu0 %932 }
 0x76f   :  { %3856 = vmatprep.subr.msk.mxu1 %vm330_vm1, %v935_v12 }
 0x770   :  { %v929_v49 = vpop.permute.xlu1 %928 }
 0x772   :  { %v4316_v42 = vpop.eup %4315  ;;  %v931_v20 = vpop.permute.xlu0 %930 }
 0x773   :  { %v838_v14 = vmul.f32 %v4316_v42, %v4312_v27  ;;  %v1163_v27 = vld [vmem:[#allocation7 + $0x30] sm:$0xff] }
 0x774   :  { %v4318_v43 = vpop.eup %4317 }
 0x775   :  { %v837_v44 = vmul.f32 %v4318_v43, %v4314_v31  ;;  %v840_v45 = vadd.f32 %v838_v14, %v636_v15  ;;  %v1161_v31 = vld [vmem:[#allocation7 + $0x20] sm:$0xff] }
 0x777   :  { %v839_v46 = vadd.f32 %v837_v44, %v635_v18  ;;  %3853 = vmatprep.mubr.msk.f32.mxu1 %vm416_vm8, %v837_v44 }
 0x778   :  { %3854 = vmatmul.mubr.msk.f32.vlgmr.msra.gmra.mxu1 %vm416_vm8, %v838_v14 }
 0x779   :  { %3857 = vmatpush3.xpose.msk.msra.mxu1 %vm330_vm1, %v935_v12  ;;  %3860 = vmatprep.mubr.msk.f32.mxu1 %vm330_vm1, %v929_v49 }
 0x77a   :  { %3858 = vmatprep.subr.msk.mxu1 %vm330_vm1, %v933_v51 }
 0x77d   :  { %3859 = vmatpush3.xpose.msk.msra.mxu1 %vm330_vm1, %v933_v51 }
 0x77e   :  { %3881 = vmatprep.subr.mxu1 %v4743_v33 }
 0x780   :  { %3861 = vmatmul.mubr.msk.f32.vlgmr.msra.gmra.mxu1 %vm330_vm1, %v931_v20  ;;  %v4767_v20 = vld [vmem:[#allocation7 + $0x48] sm:$0xff] }
 0x781   :  { %3882 = vmatpush3.msra.mxu1 %v4743_v33 }
 0x782   :  { %3883 = vmatprep.subr.mxu1 %v4746_v35 }
 0x783   :  { %3884 = vmatpush3.msra.mxu1 %v4746_v35 }
 0x784   :  { %3885 = vmatprep.subr.mxu1 %v4767_v20 }
 0x785   :  { %3886 = vmatpush3.msra.mxu1 %v4767_v20 }
 0x838   :  { %v3855_v19 = vpop.f32.mrf.mxu1 }
 0x83a   :  { %v919_v52 = vpop.f32.mrf.mxu1 }
 0x840   :  { %v3862_v53 = vpop.f32.mrf.mxu1 }
 0x841   :  { %v1016_v54 = vadd.f32 %v3862_v53, %v4618_v48 }
 0x842   :  { %v1010_v55 = vpop.f32.mrf.mxu1 }
 0x843   :  { %v1011_v56 = vadd.f32 %v1010_v55, %v4621_v50  ;;  %v1022_v57 = vsel %vm416_vm8, %v1016_v54, -inf }
 0x844   :  { %1023 = vmax.xlane.f32.xlu0 %v1022_v57 }
 0x845   :  { %v1019_v58 = vsel %vm416_vm8, %v1011_v56, -inf }
 0x846   :  { %1020 = vmax.xlane.f32.xlu1 %v1019_v58 }
 0x8cd   :  { %v1024_v59 = vpop.xlane.xlu0 %1023 }
 0x8ce   :  { %v1026_v60 = vsub.f32 %v1016_v54, %v1024_v59 }
 0x8cf   :  { %v1021_v61 = vpop.xlane.xlu1 %1020 }
 0x8d0   :  { %v1029_v62 = vmul.f32 1.442695, %v1026_v60  ;;  %v1025_v63 = vsub.f32 %v1011_v56, %v1021_v61  ;;  %v4779_v61 = vld [vmem:[#allocation2] sm:$0xff] }
 0x8d2   :  { %4319 = vpow2.f32 %v1029_v62  ;;  %v1027_v3 = vmul.f32 1.442695, %v1025_v63  ;;  %v1314_v62 = vld [vmem:[#allocation5] sm:$0xff] }
 0x8d3   :  { %v1330_v63 = vadd.f32 %v1314_v62, %v4779_v61 }
 0x8d4   :  { %4321 = vpow2.f32 %v1027_v3 }
 0x8df   :  { %v4320_v4 = vpop.eup %4319 }
 0x8e0   :  { %v1034_v48 = vsel %vm416_vm8, %v4320_v4, 0.0 }
 0x8e1   :  { %v4322_v7 = vpop.eup %4321  ;;  %1035 = vadd.xlane.f32.xlu1 %v1034_v48 }
 0x8e2   :  { %v1031_v50 = vsel %vm416_vm8, %v4322_v7, 0.0 }
 0x8e3   :  { %1032 = vadd.xlane.f32.xlu0 %v1031_v50  ;;  %v1315_v50 = vld [vmem:[#allocation5 + $0x8] sm:$0xff] }
 0x8f2   :  { %1043 = vrot.lane.b32.xlu1 %v4636_v8, %s4471_s13 }
 0x8f6   :  { %1132 = vrot.lane.b32.xlu1 %v4689_v1, %s4460_s11 }
 0x8f9   :  { %1045 = vrot.lane.b32.xlu0 %v4634_v5, %s4471_s13 }
 0x8fa   :  { %1140 = vrot.lane.b32.xlu1 %v919_v52, %s4472_s14  ;;  %v3405_v52 = vld [vmem:[#allocation7 + $0xe8] ss:$0 sm:$0xff] }
 0x8fd   :  { %1134 = vrot.lane.b32.xlu0 %v4687_v0, %s4460_s11 }
 0x901   :  { %1142 = vrot.lane.b32.xlu0 %v3855_v19, %s4472_s14 }
 0x96a   :  { %v1036_v9 = vpop.xlane.xlu1 %1035 }
 0x96b   :  { %4323 = vrcp.f32 %v1036_v9 }
 0x96c   :  { %v1033_v10 = vpop.xlane.xlu0 %1032 }
 0x96d   :  { %4325 = vrcp.f32 %v1033_v10 }
 0x96e   :  { %v1044_v8 = vpop.permute.xlu1 %1043 }
 0x970   :  { %v1046_v11 = vpop.permute.xlu0 %1045 }
 0x971   :  { %3863 = vmatprep.subr.mxu0 %v1046_v11 }
 0x972   :  { %3864 = vmatpush3.msra.mxu0 %v1046_v11  ;;  %v1133_v12 = vpop.permute.xlu1 %1132  ;;  %v4795_v11 = vld [vmem:[#allocation2 + $0x10] sm:$0xff] }
 0x973   :  { %3865 = vmatprep.subr.mxu0 %v1044_v8  ;;  %v1154_v14 = vsel %vm330_vm1, %v4661_v25, %v1133_v12  ;;  %v4813_v12 = vld [vmem:[#allocation2 + $0x30] sm:$0xff] }
 0x974   :  { %3866 = vmatpush3.msra.mxu0 %v1044_v8  ;;  %v1135_v41 = vpop.permute.xlu0 %1134  ;;  %v1316_v8 = vld [vmem:[#allocation5 + $0x10] sm:$0xff] }
 0x975   :  { %3870 = vmatprep.subr.mxu0 %v1164_v26  ;;  %v1155_v18 = vsel %vm330_vm1, %v4659_v23, %v1135_v41  ;;  %v4771_v23 = vld [vmem:[#allocation7 + $0x40] sm:$0xff]  ;;  %v1319_v41 = vld [vmem:[#allocation5 + $0x28] sm:$0xff] }
 0x976   :  { %v1141_v15 = vpop.permute.xlu1 %1140  ;;  %3887 = vmatprep.subr.mxu1 %v4771_v23 }
 0x977   :  { %v1156_v44 = vsel %vm416_vm8, %v1154_v14, %v1141_v15  ;;  %3888 = vmatpush3.msra.mxu1 %v4771_v23 }
 0x978   :  { %v4324_v1 = vpop.eup %4323  ;;  %v1143_v42 = vpop.permute.xlu0 %1142 }
 0x979   :  { %v1040_v5 = vmul.f32 %v4324_v1, %v4320_v4 }
 0x97a   :  { %v4326_v13 = vpop.eup %4325 }
 0x97b   :  { %v1039_v16 = vmul.f32 %v4326_v13, %v4322_v7  ;;  %v1042_v17 = vadd.f32 %v1040_v5, %v840_v45  ;;  %v4789_v7 = vld [vmem:[#allocation2 + $0x8] sm:$0xff] }
 0x97d   :  { %v1041_v21 = vadd.f32 %v1039_v16, %v839_v46  ;;  %3867 = vmatprep.mubr.msk.f32.mxu0 %vm416_vm8, %v1039_v16  ;;  %v1295_v0 = vmul.f32 0.25, %v1042_v17  ;;  %v1157_v46 = vsel %vm416_vm8, %v1155_v18, %v1143_v42  ;;  %v1331_v17 = vadd.f32 %v1315_v50, %v4789_v7  ;;  %v1320_v42 = vld [vmem:[#allocation5 + $0x30] sm:$0xff]  ;;  %v1321_v18 = vld [vmem:[#allocation5 + $0x38] sm:$0xff] }
 0x97e   :  { %3868 = vmatmul.mubr.msk.f32.vlgmr.msra.gmra.mxu0 %vm416_vm8, %v1040_v5  ;;  %v1336_v14 = vadd.f32 %v1320_v42, %v4813_v12  ;;  %v4859_v50 = vld [vmem:[#allocation2 + $0x78] sm:$0xff] }
 0x97f   :  { %v1294_v22 = vmul.f32 0.25, %v1041_v21  ;;  %1297 = vst.msk [vmem:[%s5495_s8 + $0x8] sm:$0xff] %vm416_vm8, %v1295_v0  ;;  %3871 = vmatpush3.msra.mxu0 %v1164_v26  ;;  %v1332_v21 = vadd.f32 %v1316_v8, %v4795_v11  ;;  %v4802_v0 = vld [vmem:[#allocation2 + $0x18] sm:$0xff] }
 0x980   :  { %3872 = vmatprep.subr.mxu0 %v1163_v27 }
 0x981   :  { %1296 = vst.msk [vmem:[%s5495_s8] sm:$0xff] %vm416_vm8, %v1294_v22  ;;  %3873 = vmatpush3.msra.mxu0 %v1163_v27  ;;  %s4473_s8 = smov 24   ;;  %v1317_v22 = vld [vmem:[#allocation5 + $0x18] sm:$0xff]  ;;  %v4805_v27 = vld [vmem:[#allocation2 + $0x20] sm:$0xff] }
 0x982   :  { %3874 = vmatprep.subr.mxu0 %v1162_v29 }
 0x983   :  { %3875 = vmatpush3.msra.mxu0 %v1162_v29  ;;  %v1318_v29 = vld [vmem:[#allocation5 + $0x20] sm:$0xff] }
 0x984   :  { %3876 = vmatprep.subr.mxu0 %v1161_v31 }
 0x985   :  { %3877 = vmatpush3.msra.mxu0 %v1161_v31  ;;  %v1333_v31 = vadd.f32 %v1317_v22, %v4802_v0  ;;  %v3408_v22 = vld [vmem:[#allocation7 + $0x110] ss:$0 sm:$0xff] }
 0xa3e   :  { %v3869_v37 = vpop.f32.mrf.mxu0 }
 0xa3f   :  { %1150 = vrot.lane.b32.xlu0 %v3869_v37, %s4473_s8  ;;  %v1334_v37 = vadd.f32 %v1318_v29, %v4805_v27 }
 0xa40   :  { %v1121_v38 = vpop.f32.mrf.mxu0 }
 0xa41   :  { %1148 = vrot.lane.b32.xlu1 %v1121_v38, %s4473_s8  ;;  %v4811_v38 = vld [vmem:[#allocation2 + $0x28] sm:$0xff] }
 0xa42   :  { %v1335_v15 = vadd.f32 %v1319_v41, %v4811_v38 }
 0xa43   :  { %1448 = vrot.lane.b32.xlu0 %v4743_v33, %s4463_s1 }
 0xa45   :  { %1446 = vrot.lane.b32.xlu1 %v4746_v35, %s4463_s1 }
 0xab1   :  { %v1151_v43 = vpop.permute.xlu0 %1150 }
 0xab2   :  { %v1160_v51 = vsel %vm1158_vm9, %v1157_v46, %v1151_v43  ;;  %v4819_v43 = vld [vmem:[#allocation2 + $0x38] sm:$0xff] }
 0xab3   :  { %v1149_v45 = vpop.permute.xlu1 %1148  ;;  %v1337_v46 = vadd.f32 %v1321_v18, %v4819_v43 }
 0xab4   :  { %v1159_v49 = vsel %vm1158_vm9, %v1156_v44, %v1149_v45  ;;  %v4821_v44 = vld [vmem:[#allocation2 + $0x40] sm:$0xff] }
 0xab5   :  { %3878 = vmatprep.mubr.msk.f32.mxu0 %vm139_vm0, %v1159_v49  ;;  %v1449_v25 = vpop.permute.xlu0 %1448  ;;  %v1322_v45 = vld [vmem:[#allocation5 + $0x40] sm:$0xff] }
 0xab6   :  { %3879 = vmatmul.mubr.msk.f32.vlgmr.msra.gmra.mxu0 %vm139_vm0, %v1160_v51  ;;  %3892 = vmatprep.subr.mxu0 %v1449_v25  ;;  %v1338_v49 = vadd.f32 %v1322_v45, %v4821_v44  ;;  %v4827_v51 = vld [vmem:[#allocation2 + $0x48] sm:$0xff] }
 0xab7   :  { %v1447_v19 = vpop.permute.xlu1 %1446  ;;  %3893 = vmatpush3.msra.mxu0 %v1449_v25  ;;  %3900 = vmatprep.mubr.msk.f32.mxu0 %vm139_vm0, %v1330_v63  ;;  %v1323_v25 = vld [vmem:[#allocation5 + $0x48] sm:$0xff] }
 0xab8   :  { %3894 = vmatprep.subr.mxu0 %v1447_v19  ;;  %v4847_v63 = vld [vmem:[#allocation2 + $0x68] sm:$0xff] }
 0xab9   :  { %3895 = vmatpush3.msra.mxu0 %v1447_v19  ;;  %v4829_v19 = vld [vmem:[#allocation2 + $0x50] sm:$0xff] }
 0xb76   :  { %v3880_v53 = vpop.f32.mrf.mxu0 }
 0xb77   :  { %v1248_v54 = vadd.f32 %v3880_v53, %v3405_v52  ;;  %v1339_v53 = vadd.f32 %v1323_v25, %v4827_v51 }
 0xb78   :  { %v1242_v55 = vpop.f32.mrf.mxu0 }
 0xb79   :  { %v1243_v56 = vadd.f32 %v3405_v52, %v1242_v55  ;;  %v1252_v57 = vadd.f32 %v1248_v54, %v4550_v6  ;;  %v1324_v52 = vld [vmem:[#allocation5 + $0x50] sm:$0xff]  ;;  %v4835_v55 = vld [vmem:[#allocation2 + $0x58] sm:$0xff] }
 0xb7a   :  { %v1340_v54 = vadd.f32 %v1324_v52, %v4829_v19 }
 0xb7b   :  { %v1256_v58 = vsel %vm139_vm0, %v1252_v57, 0.0  ;;  %v1251_v59 = vadd.f32 %v1243_v56, %v4541_v2  ;;  %v1325_v56 = vld [vmem:[#allocation5 + $0x58] sm:$0xff] }
 0xb7c   :  { %1257 = vadd.xlane.f32.xlu0 %v1256_v58  ;;  %v1326_v58 = vld [vmem:[#allocation5 + $0x60] sm:$0xff] }
 0xb7d   :  { %v1253_v60 = vsel %vm139_vm0, %v1251_v59, 0.0 }
 0xb7e   :  { %1254 = vadd.xlane.f32.xlu1 %v1253_v60  ;;  %v4841_v60 = vld [vmem:[#allocation7 + $0xf0] ss:$0 sm:$0xff] }
 0xb8f   :  { %1444 = vrot.lane.b32.xlu1 %v4767_v20, %s4463_s1 }
 0xb92   :  { %1442 = vrot.lane.b32.xlu0 %v4771_v23, %s4463_s1 }
 0xc05   :  { %v1258_v6 = vpop.xlane.xlu0 %1257 }
 0xc06   :  { %v1261_v3 = vmul.f32 0.03125, %v1258_v6  ;;  %v1327_v6 = vld [vmem:[#allocation5 + $0x68] sm:$0xff] }
 0xc07   :  { %v1255_v2 = vpop.xlane.xlu1 %1254 }
 0xc08   :  { %v4787_v4 = vsub.f32 %v1252_v57, %v1261_v3  ;;  %v1260_v48 = vmul.f32 0.03125, %v1255_v2  ;;  %v4837_v57 = vld [vmem:[#allocation2 + $0x60] sm:$0xff]  ;;  %v4849_v3 = vld [vmem:[#allocation2 + $0x70] sm:$0xff] }
 0xc09   :  { %v1443_v5 = vpop.permute.xlu0 %1442  ;;  %v1342_v62 = vadd.f32 %v1326_v58, %v4837_v57  ;;  %v1328_v2 = vld [vmem:[#allocation5 + $0x70] sm:$0xff] }
 0xc0a   :  { %v4791_v9 = vsub.f32 %v1251_v59, %v1260_v48  ;;  %v1265_v10 = vmul.f32 %v4787_v4, %v4787_v4  ;;  %v1341_v59 = vadd.f32 %v1325_v56, %v4835_v55  ;;  %v1343_v48 = vadd.f32 %v1327_v6, %v4847_v63 }
 0xc0b   :  { %v1445_v1 = vpop.permute.xlu1 %1444 }
 0xc0c   :  { %3896 = vmatprep.subr.mxu0 %v1445_v1  ;;  %v1269_v13 = vsel %vm139_vm0, %v1265_v10, 0.0  ;;  %v1264_v16 = vmul.f32 %v4791_v9, %v4791_v9  ;;  %v1329_v10 = vld [vmem:[#allocation5 + $0x78] sm:$0xff] }
 0xc0d   :  { %1270 = vadd.xlane.f32.xlu0 %v1269_v13  ;;  %3897 = vmatpush3.msra.mxu0 %v1445_v1  ;;  %v1345_v8 = vadd.f32 %v1329_v10, %v4859_v50 }
 0xc0e   :  { %3898 = vmatprep.subr.mxu0 %v1443_v5  ;;  %v1266_v26 = vsel %vm139_vm0, %v1264_v16, 0.0 }
 0xc0f   :  { %1267 = vadd.xlane.f32.xlu1 %v1266_v26  ;;  %3899 = vmatpush3.msra.mxu0 %v1443_v5 }
 0xc10   :  { %3901 = vmatmul.mubr.msk.f32.vlgmr.msra.gmra.mxu0 %vm139_vm0, %v1331_v17 }
 0xc11   :  { %3903 = vmatprep.mubr.msk.f32.mxu0 %vm139_vm0, %v1332_v21 }
 0xc14   :  { %3904 = vmatmul.mubr.msk.f32.gmra.mxu0 %vm139_vm0, %v1333_v31 }
 0xc15   :  { %3906 = vmatprep.mubr.msk.f32.mxu0 %vm139_vm0, %v1334_v37  ;;  %v3409_v37 = vld [vmem:[#allocation7 + $0x118] ss:$0 sm:$0xff] }
 0xc18   :  { %3907 = vmatmul.mubr.msk.f32.gmra.mxu0 %vm139_vm0, %v1335_v15 }
 0xc19   :  { %3909 = vmatprep.mubr.msk.f32.mxu0 %vm139_vm0, %v1336_v14 }
 0xc1c   :  { %3910 = vmatmul.mubr.msk.f32.gmra.mxu0 %vm139_vm0, %v1337_v46 }
 0xc1d   :  { %3912 = vmatprep.mubr.msk.f32.mxu0 %vm139_vm0, %v1338_v49 }
 0xc20   :  { %3913 = vmatmul.mubr.msk.f32.gmra.mxu0 %vm139_vm0, %v1339_v53  ;;  %1657 = vrot.lane.b32.xlu1 %v4743_v33, %s4462_s0  ;;  %v1344_v33 = vadd.f32 %v1328_v2, %v4849_v3 }
 0xc21   :  { %3915 = vmatprep.mubr.msk.f32.mxu0 %vm139_vm0, %v1340_v54 }
 0xc23   :  { %1455 = vrot.lane.b32.xlu0 %v4841_v60, %s4463_s1 }
 0xc24   :  { %3916 = vmatmul.mubr.msk.f32.gmra.mxu0 %vm139_vm0, %v1341_v59  ;;  %1655 = vrot.lane.b32.xlu1 %v4746_v35, %s4462_s0 }
 0xc25   :  { %3918 = vmatprep.mubr.msk.f32.mxu0 %vm139_vm0, %v1342_v62 }
 0xc27   :  { %1653 = vrot.lane.b32.xlu0 %v4767_v20, %s4462_s0 }
 0xc28   :  { %3919 = vmatmul.mubr.msk.f32.gmra.mxu0 %vm139_vm0, %v1343_v48  ;;  %1651 = vrot.lane.b32.xlu1 %v4771_v23, %s4462_s0 }
 0xc29   :  { %3921 = vmatprep.mubr.msk.f32.mxu0 %vm139_vm0, %v1344_v33 }
 0xc2c   :  { %3922 = vmatmul.mubr.msk.f32.gmra.mxu0 %vm139_vm0, %v1345_v8 }
 0xc96   :  { %v1271_v35 = vpop.xlane.xlu0 %1270 }
 0xc97   :  { %v1273_v1 = vmul.f32 0.03125, %v1271_v35 }
 0xc98   :  { %v1268_v5 = vpop.xlane.xlu1 %1267 }
 0xc99   :  { %v1275_v13 = vadd.f32 1e-05, %v1273_v1  ;;  %v1272_v16 = vmul.f32 0.03125, %v1268_v5 }
 0xc9a   :  { %v1456_v59 = vpop.permute.xlu0 %1455 }
 0xc9b   :  { %4327 = vrsqrt.f32 %v1275_v13  ;;  %v1274_v17 = vadd.f32 1e-05, %v1272_v16 }
 0xc9c   :  { %v1658_v8 = vpop.permute.xlu1 %1657 }
 0xc9d   :  { %4329 = vrsqrt.f32 %v1274_v17  ;;  %3924 = vmatprep.subr.mxu1 %v1658_v8 }
 0xc9e   :  { %v1654_v5 = vpop.permute.xlu0 %1653 }
 0xca0   :  { %v1656_v1 = vpop.permute.xlu1 %1655 }
 0xca8   :  { %v4328_v20 = vpop.eup %4327 }
 0xca9   :  { %v1279_v21 = vmul.f32 %v4328_v20, %v4787_v4 }
 0xcaa   :  { %v4330_v26 = vpop.eup %4329 }
 0xcab   :  { %v1278_v29 = vmul.f32 %v4330_v26, %v4791_v9  ;;  %v1286_v23 = vmul.f32 %v3408_v22, %v1279_v21 }
 0xcad   :  { %v1285_v31 = vmul.f32 %v3408_v22, %v1278_v29  ;;  %v4873_v42 = vadd.f32 %v3409_v37, %v1286_v23 }
 0xcaf   :  { %v4871_v41 = vadd.f32 %v3409_v37, %v1285_v31 }
 0xcb1   :  { %3889 = vmatprep.mubr.msk.f32.mxu1 %vm139_vm0, %v4871_v41 }
 0xcb2   :  { %3890 = vmatmul.mubr.msk.f32.vlgmr.msra.gmra.mxu1 %vm139_vm0, %v4873_v42 }
 0xcb3   :  { %3932 = vmatprep.mubr.msk.f32.mxu1 %vm139_vm0, %v4779_v61  ;;  %3925 = vmatpush3.msra.mxu1 %v1658_v8 }
 0xcb4   :  { %3926 = vmatprep.subr.mxu1 %v1656_v1 }
 0xcb5   :  { %3927 = vmatpush3.msra.mxu1 %v1656_v1 }
 0xcb6   :  { %3928 = vmatprep.subr.mxu1 %v1654_v5 }
 0xcb7   :  { %3929 = vmatpush3.msra.mxu1 %v1654_v5 }
 0xcd0   :  { %v4881_v4 = vpop.f32.mrf.mxu0 }
 0xcd1   :  { %v4968_v23 = vadd.f32 %v4881_v4, %v1456_v59 }
 0xcd2   :  { %v4883_v15 = vpop.f32.mrf.mxu0 }
 0xcd3   :  { %v4975_v31 = vadd.f32 %v4883_v15, %v1456_v59  ;;  %v1652_v15 = vpop.permute.xlu1 %1651 }
 0xcd4   :  { %v3905_v9 = vpop.f32.mrf.mxu0  ;;  %3930 = vmatprep.subr.mxu1 %v1652_v15 }
 0xcd5   :  { %v4955_v26 = vadd.f32 %v3905_v9, %v1456_v59  ;;  %3931 = vmatpush3.msra.mxu1 %v1652_v15 }
 0xcd6   :  { %v1582_v14 = vpop.f32.mrf.mxu0  ;;  %3933 = vmatmul.mubr.msk.f32.vlgmr.msra.gmra.mxu1 %vm139_vm0, %v4789_v7  ;;  %v112_v7 = vmul.f32 0.125, %v4595_v28 }
 0xcd7   :  { %v4961_v29 = vadd.f32 %v1582_v14, %v1456_v59  ;;  %3935 = vmatprep.mubr.msk.f32.mxu1 %vm139_vm0, %v4795_v11  ;;  %v118_v11 = vld [vmem:[%s5492_s5] sm:$0x1]  ;;  %s4474_s5 = smov [#allocation8]  }
 0xcd8   :  { %v3908_v18 = vpop.f32.mrf.mxu0  ;;  %vm119_vm10 = vcmp.lt.f32.partialorder %v118_v11, 0.5  ;;  %s3359_s20 = sshll.u32 %s4474_s5, 4  ;;  %s3360_s20 = int_to_ptr.vmem [resolvable:$true] %s3359_s20 }
 0xcd9   :  { %v4943_v21 = vadd.f32 %v3908_v18, %v1456_v59  ;;  %s4431_s2 = scalar_lea.vmem %s3360_s20, 256  ;;  %p4436_p2 = scmp.lt.s32.totalorder %s3360_s20, %s3360_s20 }
 0xcda   :  { %v1592_v45 = vpop.f32.mrf.mxu0  ;;  %3936 = vmatmul.mubr.msk.f32.gmra.mxu1 %vm139_vm0, %v4802_v0  ;;  %v113_v0 = vfloor.f32 %v112_v7  ;;  %p4432_p1 = scmp.ne.s32.totalorder %s3360_s20, %s4431_s2  ;;  %p4437_p3 = scmp.lt.s32.totalorder %s4431_s2, %s4431_s2 }
 0xcdb   :  { %v4949_v22 = vadd.f32 %v1592_v45, %v1456_v59  ;;  %3938 = vmatprep.mubr.msk.f32.mxu1 %vm139_vm0, %v4805_v27 }
 0xcdc   :  { %v3911_v46 = vpop.f32.mrf.mxu0  ;;  %v114_v27 = vmul.f32 8.0, %v113_v0  ;;  %p4438_p4 = por %p4437_p3, %p4436_p2 }
 0xcdd   :  { %v4931_v17 = vadd.f32 %v3911_v46, %v1456_v59 }
 0xcde   :  { %v1602_v49 = vpop.f32.mrf.mxu0  ;;  %3939 = vmatmul.mubr.msk.f32.gmra.mxu1 %vm139_vm0, %v4811_v38  ;;  %v120_v38 = vsel %vm119_vm10, 1, %v4464_v40  ;;  %p4439_p5 = pnand %p4438_p4, %p4432_p1 }
 0xcdf   :  { %v4937_v20 = vadd.f32 %v1602_v49, %v1456_v59  ;;  %3941 = vmatprep.mubr.msk.f32.mxu1 %vm139_vm0, %v4813_v12  ;;  %v115_v12 = vsub.f32 %v4595_v28, %v114_v27 }
 0xce0   :  { %v3914_v25 = vpop.f32.mrf.mxu0 }
 0xce1   :  { %v4919_v13 = vadd.f32 %v3914_v25, %v1456_v59  ;;  %vm117_vm11 = vcmp.eq.f32.partialorder %v88_v34, %v115_v12  ;;  %vm116_vm13 = vcmp.eq.f32.partialorder %v87_v36, %v115_v12 }
 0xce2   :  { %v1612_v52 = vpop.f32.mrf.mxu0  ;;  %3942 = vmatmul.mubr.msk.f32.gmra.mxu1 %vm139_vm0, %v4819_v43  ;;  %v124_v43 = vrot.slane %v120_v38, %v104_v39 }
 0xce3   :  { %v4925_v16 = vadd.f32 %v1612_v52, %v1456_v59  ;;  %3944 = vmatprep.mubr.msk.f32.mxu1 %vm139_vm0, %v4821_v44 }
 0xce4   :  { %v3917_v53 = vpop.f32.mrf.mxu0  ;;  %vm125_vm12 = vcmp.eq.s32.totalorder %v124_v43, 1 }
 0xce5   :  { %v4907_v10 = vadd.f32 %v3917_v53, %v1456_v59  ;;  %vm127_vm14 = vmand %vm117_vm11, %vm125_vm12 }
 0xce6   :  { %v1622_v54 = vpop.f32.mrf.mxu0  ;;  %3945 = vmatmul.mubr.msk.f32.gmra.mxu1 %vm139_vm0, %v4827_v51  ;;  %vm126_vm15 = vmand %vm116_vm13, %vm125_vm12  ;;  %v5036_v44 = vsel %vm127_vm14, 0.0, %v4465_v47 }
 0xce7   :  { %v4913_v35 = vadd.f32 %v1622_v54, %v1456_v59  ;;  %3947 = vmatprep.mubr.msk.f32.mxu1 %vm139_vm0, %v4829_v19  ;;  %v5039_v40 = vsel %vm126_vm15, 0.0, %v4465_v47 }
 0xce8   :  { %v3920_v56 = vpop.f32.mrf.mxu0 }
 0xce9   :  { %v4895_v48 = vadd.f32 %v3920_v56, %v1456_v59 }
 0xcea   :  { %v1632_v58 = vpop.f32.mrf.mxu0  ;;  %3948 = vmatmul.mubr.msk.f32.gmra.mxu1 %vm139_vm0, %v4835_v55 }
 0xceb   :  { %v4901_v33 = vadd.f32 %v1632_v58, %v1456_v59  ;;  %3950 = vmatprep.mubr.msk.f32.mxu1 %vm139_vm0, %v4837_v57 }
 0xcec   :  { %v3923_v62 = vpop.f32.mrf.mxu0 }
 0xced   :  { %v4885_v6 = vadd.f32 %v3923_v62, %v1456_v59 }
 0xcee   :  { %v1642_v61 = vpop.f32.mrf.mxu0  ;;  %3951 = vmatmul.mubr.msk.f32.gmra.mxu1 %vm139_vm0, %v4847_v63 }
 0xcef   :  { %3956 = vmatprep.subr.msk.mxu0 %vm330_vm1, %v4885_v6  ;;  %v4889_v2 = vadd.f32 %v1642_v61, %v1456_v59  ;;  %3953 = vmatprep.mubr.msk.f32.mxu1 %vm139_vm0, %v4849_v3 }
 0xcf0   :  { %3957 = vmatpush3.xpose.msk.msra.mxu0 %vm330_vm1, %v4885_v6 }
 0xcf1   :  { %3958 = vmatprep.subr.msk.mxu0 %vm330_vm1, %v4889_v2 }
 0xcf2   :  { %3954 = vmatmul.mubr.msk.f32.gmra.mxu1 %vm139_vm0, %v4859_v50 }
 0xcf4   :  { %3959 = vmatpush3.xpose.msk.msra.mxu0 %vm330_vm1, %v4889_v2 }
 0xcf5   :  { %3960 = vmatprep.subr.msk.mxu0 %vm330_vm1, %v4895_v48 }
 0xcf8   :  { %3961 = vmatpush3.xpose.msk.msra.mxu0 %vm330_vm1, %v4895_v48 }
 0xcf9   :  { %3962 = vmatprep.subr.msk.mxu0 %vm330_vm1, %v4901_v33 }
 0xcfc   :  { %3963 = vmatpush3.xpose.msk.msra.mxu0 %vm330_vm1, %v4901_v33 }
 0xcfd   :  { %3964 = vmatprep.subr.msk.mxu0 %vm330_vm1, %v4907_v10 }
 0xd00   :  { %3965 = vmatpush3.xpose.msk.msra.mxu0 %vm330_vm1, %v4907_v10 }
 0xd01   :  { %3966 = vmatprep.subr.msk.mxu0 %vm330_vm1, %v4913_v35 }
 0xd04   :  { %3967 = vmatpush3.xpose.msk.msra.mxu0 %vm330_vm1, %v4913_v35 }
 0xd05   :  { %3968 = vmatprep.subr.msk.mxu0 %vm330_vm1, %v4919_v13 }
 0xd08   :  { %3969 = vmatpush3.xpose.msk.msra.mxu0 %vm330_vm1, %v4919_v13 }
 0xd09   :  { %3970 = vmatprep.subr.msk.mxu0 %vm330_vm1, %v4925_v16 }
 0xd0c   :  { %3971 = vmatpush3.xpose.msk.msra.mxu0 %vm330_vm1, %v4925_v16 }
 0xd0d   :  { %3972 = vmatprep.subr.msk.mxu0 %vm330_vm1, %v4931_v17 }
 0xd10   :  { %3973 = vmatpush3.xpose.msk.msra.mxu0 %vm330_vm1, %v4931_v17 }
 0xd11   :  { %3974 = vmatprep.subr.msk.mxu0 %vm330_vm1, %v4937_v20 }
 0xd14   :  { %3975 = vmatpush3.xpose.msk.msra.mxu0 %vm330_vm1, %v4937_v20 }
 0xd15   :  { %3976 = vmatprep.subr.msk.mxu0 %vm330_vm1, %v4943_v21 }
 0xd18   :  { %3977 = vmatpush3.xpose.msk.msra.mxu0 %vm330_vm1, %v4943_v21 }
 0xd19   :  { %3978 = vmatprep.subr.msk.mxu0 %vm330_vm1, %v4949_v22 }
 0xd1c   :  { %3979 = vmatpush3.xpose.msk.msra.mxu0 %vm330_vm1, %v4949_v22 }
 0xd1d   :  { %3980 = vmatprep.subr.msk.mxu0 %vm330_vm1, %v4955_v26 }
 0xd20   :  { %3981 = vmatpush3.xpose.msk.msra.mxu0 %vm330_vm1, %v4955_v26 }
 0xd21   :  { %3982 = vmatprep.subr.msk.mxu0 %vm330_vm1, %v4961_v29 }
 0xd24   :  { %3983 = vmatpush3.xpose.msk.msra.mxu0 %vm330_vm1, %v4961_v29 }
 0xd25   :  { %3984 = vmatprep.subr.msk.mxu0 %vm330_vm1, %v4968_v23 }
 0xd28   :  { %3985 = vmatpush3.xpose.msk.msra.mxu0 %vm330_vm1, %v4968_v23 }
 0xd29   :  { %3986 = vmatprep.subr.msk.mxu0 %vm330_vm1, %v4975_v31 }
 0xd2c   :  { %3987 = vmatpush3.xpose.msk.msra.mxu0 %vm330_vm1, %v4975_v31 }
 0xd72   :  { %v3891_v37 = vpop.f32.mrf.mxu1 }
 0xd73   :  { %v1433_v4 = vadd.f32 %v3891_v37, %v4841_v60 }
 0xd74   :  { %v1427_v9 = vpop.f32.mrf.mxu1 }
 0xd75   :  { %v1428_v14 = vadd.f32 %v4841_v60, %v1427_v9  ;;  %v4987_v45 = vmul.f32 0.35355338, %v1433_v4 }
 0xd77   :  { %v4985_v18 = vmul.f32 0.35355338, %v1428_v14 }
 0xd79   :  { %3988 = vmatprep.mubr.msk.f32.mxu0 %vm330_vm1, %v4985_v18 }
 0xd7a   :  { %3989 = vmatmul.mubr.msk.f32.vlgmr.msra.gmra.mxu0 %vm330_vm1, %v4987_v45 }
 0xd96   :  { %v5065_v30 = vpop.f32.mrf.mxu1 }
 0xd98   :  { %v5067_v32 = vpop.f32.mrf.mxu1 }
 0xd9a   :  { %v3937_v34 = vpop.f32.mrf.mxu1 }
 0xd9c   :  { %v1790_v36 = vpop.f32.mrf.mxu1 }
 0xd9e   :  { %v3940_v47 = vpop.f32.mrf.mxu1 }
 0xda0   :  { %v1800_v19 = vpop.f32.mrf.mxu1 }
 0xda2   :  { %v3943_v55 = vpop.f32.mrf.mxu1 }
 0xda4   :  { %v1810_v57 = vpop.f32.mrf.mxu1 }
 0xe3a   :  { %v3990_v51 = vpop.f32.mrf.mxu0 }
 0xe3b   :  { %v1985_v28 = vadd.f32 %v3990_v51, %v5036_v44 }
 0xe3c   :  { %v1979_v24 = vpop.f32.mrf.mxu0 }
 0xe3d   :  { %v1980_v39 = vadd.f32 %v1979_v24, %v5039_v40  ;;  %1990 = vmax.xlane.f32.xlu1 %v1985_v28 }
 0xe3f   :  { %1988 = vmax.xlane.f32.xlu0 %v1980_v39 }
 0xe55   :  { %1663 = vrot.lane.b32.xlu0 %v4841_v60, %s4462_s0  ;;  %v3946_v60 = vpop.f32.mrf.mxu1 }
 0xe57   :  { %v1820_v63 = vpop.f32.mrf.mxu1 }
 0xe59   :  { %2113 = vrot.lane.b32.xlu0 %v4889_v2, %s4467_s29  ;;  %v3949_v3 = vpop.f32.mrf.mxu1 }
 0xe5b   :  { %v1830_v50 = vpop.f32.mrf.mxu1 }
 0xe5d   :  { %2111 = vrot.lane.b32.xlu0 %v4895_v48, %s4467_s29  ;;  %v3952_v46 = vpop.f32.mrf.mxu1 }
 0xe5f   :  { %v1840_v25 = vpop.f32.mrf.mxu1 }
 0xe61   :  { %2109 = vrot.lane.b32.xlu0 %v4901_v33, %s4467_s29  ;;  %v3955_v58 = vpop.f32.mrf.mxu1 }
 0xe63   :  { %v1850_v62 = vpop.f32.mrf.mxu1 }
 0xe65   :  { %2105 = vrot.lane.b32.xlu0 %v4913_v35, %s4467_s29 }
 0xe69   :  { %2101 = vrot.lane.b32.xlu0 %v4925_v16, %s4467_s29 }
 0xe6d   :  { %2097 = vrot.lane.b32.xlu0 %v4937_v20, %s4467_s29 }
 0xe71   :  { %2093 = vrot.lane.b32.xlu0 %v4949_v22, %s4467_s29 }
 0xe75   :  { %2089 = vrot.lane.b32.xlu0 %v4961_v29, %s4467_s29 }
 0xe79   :  { %2085 = vrot.lane.b32.xlu0 %v4975_v31, %s4467_s29 }
 0xe7d   :  { %2083 = vrot.lane.b32.xlu0 %v4987_v45, %s4467_s29 }
 0xec6   :  { %v1991_v49 = vpop.xlane.xlu1 %1990 }
 0xec7   :  { %v1993_v52 = vsub.f32 %v1985_v28, %v1991_v49 }
 0xec8   :  { %v1989_v53 = vpop.xlane.xlu0 %1988 }
 0xec9   :  { %v1996_v54 = vmul.f32 1.442695, %v1993_v52  ;;  %v1992_v56 = vsub.f32 %v1980_v39, %v1989_v53 }
 0xecb   :  { %4331 = vpow2.f32 %v1996_v54  ;;  %v1994_v59 = vmul.f32 1.442695, %v1992_v56 }
 0xecc   :  { %v1664_v61 = vpop.permute.xlu0 %1663 }
 0xecd   :  { %4333 = vpow2.f32 %v1994_v59  ;;  %v5069_v8 = vadd.f32 %v3955_v58, %v1664_v61  ;;  %v5071_v1 = vadd.f32 %v1850_v62, %v1664_v61  ;;  %v5073_v5 = vadd.f32 %v3952_v46, %v1664_v61 }
 0xece   :  { %v5077_v37 = vadd.f32 %v1840_v25, %v1664_v61  ;;  %v5081_v4 = vadd.f32 %v3949_v3, %v1664_v61  ;;  %v5085_v14 = vadd.f32 %v1830_v50, %v1664_v61  ;;  %v5089_v15 = vadd.f32 %v3946_v60, %v1664_v61 }
 0xecf   :  { %3991 = vmatprep.subr.mxu1 %v5069_v8  ;;  %v5093_v11 = vadd.f32 %v1820_v63, %v1664_v61  ;;  %v5097_v0 = vadd.f32 %v3943_v55, %v1664_v61  ;;  %v5101_v27 = vadd.f32 %v1810_v57, %v1664_v61  ;;  %v5105_v38 = vadd.f32 %v3940_v47, %v1664_v61 }
 0xed0   :  { %3992 = vmatpush3.msra.mxu1 %v5069_v8  ;;  %v5109_v12 = vadd.f32 %v1800_v19, %v1664_v61  ;;  %v5113_v43 = vadd.f32 %v3937_v34, %v1664_v61  ;;  %v5117_v51 = vadd.f32 %v1790_v36, %v1664_v61  ;;  %v5122_v28 = vadd.f32 %v5065_v30, %v1664_v61  ;;  %v2114_v55 = vpop.permute.xlu0 %2113 }
 0xed1   :  { %3993 = vmatprep.subr.mxu1 %v5071_v1  ;;  %v5127_v24 = vadd.f32 %v5067_v32, %v1664_v61 }
 0xed2   :  { %3994 = vmatpush3.msra.mxu1 %v5071_v1 }
 0xed3   :  { %3995 = vmatprep.subr.mxu1 %v5073_v5 }
 0xed4   :  { %3996 = vmatpush3.msra.mxu1 %v5073_v5  ;;  %v2112_v50 = vpop.permute.xlu0 %2111 }
 0xed5   :  { %3997 = vmatprep.subr.mxu1 %v5077_v37 }
 0xed6   :  { %3998 = vmatpush3.msra.mxu1 %v5077_v37 }
 0xed7   :  { %3999 = vmatprep.subr.mxu1 %v5081_v4 }
 0xed8   :  { %v4332_v9 = vpop.eup %4331  ;;  %4000 = vmatpush3.msra.mxu1 %v5081_v4  ;;  %v2110_v49 = vpop.permute.xlu0 %2109 }
 0xed9   :  { %2000 = vadd.xlane.f32.xlu1 %v4332_v9  ;;  %4001 = vmatprep.subr.mxu1 %v5085_v14 }
 0xeda   :  { %v4334_v7 = vpop.eup %4333  ;;  %4002 = vmatpush3.msra.mxu1 %v5085_v14 }
 0xedb   :  { %4003 = vmatprep.subr.mxu1 %v5089_v15 }
 0xedc   :  { %4004 = vmatpush3.msra.mxu1 %v5089_v15  ;;  %v2106_v53 = vpop.permute.xlu0 %2105 }
 0xedd   :  { %1998 = vadd.xlane.f32.xlu1 %v4334_v7  ;;  %4005 = vmatprep.subr.mxu1 %v5093_v11 }
 0xede   :  { %4006 = vmatpush3.msra.mxu1 %v5093_v11 }
 0xedf   :  { %4007 = vmatprep.subr.mxu1 %v5097_v0 }
 0xee0   :  { %4008 = vmatpush3.msra.mxu1 %v5097_v0  ;;  %v2102_v54 = vpop.permute.xlu0 %2101 }
 0xee1   :  { %4009 = vmatprep.subr.mxu1 %v5101_v27 }
 0xee2   :  { %4010 = vmatpush3.msra.mxu1 %v5101_v27 }
 0xee3   :  { %4011 = vmatprep.subr.mxu1 %v5105_v38 }
 0xee4   :  { %4012 = vmatpush3.msra.mxu1 %v5105_v38  ;;  %v2098_v56 = vpop.permute.xlu0 %2097 }
 0xee5   :  { %4013 = vmatprep.subr.mxu1 %v5109_v12 }
 0xee6   :  { %4014 = vmatpush3.msra.mxu1 %v5109_v12 }
 0xee7   :  { %4015 = vmatprep.subr.mxu1 %v5113_v43 }
 0xee8   :  { %4016 = vmatpush3.msra.mxu1 %v5113_v43  ;;  %v2094_v58 = vpop.permute.xlu0 %2093 }
 0xee9   :  { %4017 = vmatprep.subr.mxu1 %v5117_v51 }
 0xeea   :  { %4018 = vmatpush3.msra.mxu1 %v5117_v51 }
 0xeeb   :  { %4019 = vmatprep.subr.mxu1 %v5122_v28 }
 0xeec   :  { %4020 = vmatpush3.msra.mxu1 %v5122_v28  ;;  %v2090_v59 = vpop.permute.xlu0 %2089 }
 0xeed   :  { %4021 = vmatprep.subr.mxu1 %v5127_v24 }
 0xeee   :  { %2115 = vrot.lane.b32.xlu1 %v4885_v6, %s4467_s29  ;;  %4022 = vmatpush3.msra.mxu1 %v5127_v24 }
 0xef0   :  { %v2086_v62 = vpop.permute.xlu0 %2085 }
 0xef2   :  { %2107 = vrot.lane.b32.xlu1 %v4907_v10, %s4467_s29 }
 0xef4   :  { %v2084_v61 = vpop.permute.xlu0 %2083 }
 0xef6   :  { %2103 = vrot.lane.b32.xlu1 %v4919_v13, %s4467_s29 }
 0xefa   :  { %2099 = vrot.lane.b32.xlu1 %v4931_v17, %s4467_s29 }
 0xefe   :  { %2095 = vrot.lane.b32.xlu1 %v4943_v21, %s4467_s29 }
 0xf02   :  { %2091 = vrot.lane.b32.xlu1 %v4955_v26, %s4467_s29 }
 0xf06   :  { %2087 = vrot.lane.b32.xlu1 %v4968_v23, %s4467_s29 }
 0xf0a   :  { %2081 = vrot.lane.b32.xlu1 %v4985_v18, %s4467_s29 }
 0xf62   :  { %v2001_v39 = vpop.xlane.xlu1 %2000 }
 0xf63   :  { %4335 = vrcp.f32 %v2001_v39 }
 0xf66   :  { %v1999_v30 = vpop.xlane.xlu1 %1998 }
 0xf67   :  { %4337 = vrcp.f32 %v1999_v30 }
 0xf6a   :  { %v2116_v32 = vpop.permute.xlu1 %2115 }
 0xf6b   :  { %4026 = vmatprep.subr.msk.mxu1 %vm330_vm1, %v2116_v32 }
 0xf6e   :  { %v2108_v34 = vpop.permute.xlu1 %2107 }
 0xf70   :  { %v4336_v47 = vpop.eup %4335 }
 0xf71   :  { %v2005_v63 = vmul.f32 %v4336_v47, %v4332_v9 }
 0xf72   :  { %v2104_v36 = vpop.permute.xlu1 %2103 }
 0xf74   :  { %v4338_v19 = vpop.eup %4337 }
 0xf75   :  { %v2004_v57 = vmul.f32 %v4338_v19, %v4334_v7 }
 0xf76   :  { %v2100_v60 = vpop.permute.xlu1 %2099 }
 0xf77   :  { %4023 = vmatprep.mubr.f32.mxu1 %v2004_v57 }
 0xf78   :  { %4024 = vmatmul.mubr.f32.vlgmr.msra.gmra.mxu1 %v2005_v63 }
 0xf79   :  { %4027 = vmatpush3.xpose.msk.msra.mxu1 %vm330_vm1, %v2116_v32 }
 0xf7a   :  { %4028 = vmatprep.subr.msk.mxu1 %vm330_vm1, %v2114_v55  ;;  %v2096_v3 = vpop.permute.xlu1 %2095 }
 0xf7d   :  { %4029 = vmatpush3.xpose.msk.msra.mxu1 %vm330_vm1, %v2114_v55 }
 0xf7e   :  { %4030 = vmatprep.subr.msk.mxu1 %vm330_vm1, %v2112_v50  ;;  %v2092_v46 = vpop.permute.xlu1 %2091 }
 0xf81   :  { %4031 = vmatpush3.xpose.msk.msra.mxu1 %vm330_vm1, %v2112_v50 }
 0xf82   :  { %4032 = vmatprep.subr.msk.mxu1 %vm330_vm1, %v2110_v49  ;;  %v2088_v25 = vpop.permute.xlu1 %2087 }
 0xf85   :  { %4033 = vmatpush3.xpose.msk.msra.mxu1 %vm330_vm1, %v2110_v49 }
 0xf86   :  { %4034 = vmatprep.subr.msk.mxu1 %vm330_vm1, %v2108_v34  ;;  %v2082_v52 = vpop.permute.xlu1 %2081 }
 0xf87   :  { %4058 = vmatprep.mubr.msk.f32.mxu1 %vm330_vm1, %v2082_v52 }
 0xf89   :  { %4035 = vmatpush3.xpose.msk.msra.mxu1 %vm330_vm1, %v2108_v34 }
 0xf8a   :  { %4036 = vmatprep.subr.msk.mxu1 %vm330_vm1, %v2106_v53 }
 0xf8d   :  { %4037 = vmatpush3.xpose.msk.msra.mxu1 %vm330_vm1, %v2106_v53 }
 0xf8e   :  { %4038 = vmatprep.subr.msk.mxu1 %vm330_vm1, %v2104_v36 }
 0xf91   :  { %4039 = vmatpush3.xpose.msk.msra.mxu1 %vm330_vm1, %v2104_v36 }
 0xf92   :  { %4040 = vmatprep.subr.msk.mxu1 %vm330_vm1, %v2102_v54 }
 0xf95   :  { %4041 = vmatpush3.xpose.msk.msra.mxu1 %vm330_vm1, %v2102_v54 }
 0xf96   :  { %4042 = vmatprep.subr.msk.mxu1 %vm330_vm1, %v2100_v60 }
 0xf99   :  { %4043 = vmatpush3.xpose.msk.msra.mxu1 %vm330_vm1, %v2100_v60 }
 0xf9a   :  { %4044 = vmatprep.subr.msk.mxu1 %vm330_vm1, %v2098_v56 }
 0xf9d   :  { %4045 = vmatpush3.xpose.msk.msra.mxu1 %vm330_vm1, %v2098_v56 }
 0xf9e   :  { %4046 = vmatprep.subr.msk.mxu1 %vm330_vm1, %v2096_v3 }
 0xfa1   :  { %4047 = vmatpush3.xpose.msk.msra.mxu1 %vm330_vm1, %v2096_v3 }
 0xfa2   :  { %4048 = vmatprep.subr.msk.mxu1 %vm330_vm1, %v2094_v58 }
 0xfa5   :  { %4049 = vmatpush3.xpose.msk.msra.mxu1 %vm330_vm1, %v2094_v58 }
 0xfa6   :  { %4050 = vmatprep.subr.msk.mxu1 %vm330_vm1, %v2092_v46 }
 0xfa9   :  { %4051 = vmatpush3.xpose.msk.msra.mxu1 %vm330_vm1, %v2092_v46 }
 0xfaa   :  { %4052 = vmatprep.subr.msk.mxu1 %vm330_vm1, %v2090_v59 }
 0xfad   :  { %4053 = vmatpush3.xpose.msk.msra.mxu1 %vm330_vm1, %v2090_v59 }
 0xfae   :  { %4054 = vmatprep.subr.msk.mxu1 %vm330_vm1, %v2088_v25 }
 0xfb1   :  { %4055 = vmatpush3.xpose.msk.msra.mxu1 %vm330_vm1, %v2088_v25 }
 0xfb2   :  { %4056 = vmatprep.subr.msk.mxu1 %vm330_vm1, %v2086_v62 }
 0xfb5   :  { %4057 = vmatpush3.xpose.msk.msra.mxu1 %vm330_vm1, %v2086_v62 }
 0xfb8   :  { %4059 = vmatmul.mubr.msk.f32.vlgmr.msra.gmra.mxu1 %vm330_vm1, %v2084_v61 }
0x1038   :  { %v5185_v9 = vpop.f32.mrf.mxu1 }
0x103a   :  { %v5187_v7 = vpop.f32.mrf.mxu1 }
0x1078   :  { %v4060_v39 = vpop.f32.mrf.mxu1 }
0x1079   :  { %v2225_v30 = vadd.f32 %v4060_v39, %v5036_v44 }
0x107a   :  { %v2219_v32 = vpop.f32.mrf.mxu1 }
0x107b   :  { %v2220_v34 = vadd.f32 %v2219_v32, %v5039_v40  ;;  %2230 = vmax.xlane.f32.xlu0 %v2225_v30 }
0x107d   :  { %2228 = vmax.xlane.f32.xlu1 %v2220_v34 }
0x108e   :  { %2290 = vrot.lane.b32.xlu1 %v5071_v1, %s4467_s29 }
0x1091   :  { %2292 = vrot.lane.b32.xlu0 %v5069_v8, %s4467_s29 }
0x1092   :  { %2286 = vrot.lane.b32.xlu1 %v5077_v37, %s4467_s29 }
0x1095   :  { %2288 = vrot.lane.b32.xlu0 %v5073_v5, %s4467_s29 }
0x1096   :  { %2282 = vrot.lane.b32.xlu1 %v5085_v14, %s4467_s29 }
0x1099   :  { %2284 = vrot.lane.b32.xlu0 %v5081_v4, %s4467_s29 }
0x109a   :  { %2280 = vrot.lane.b32.xlu1 %v5089_v15, %s4467_s29 }
0x109d   :  { %2278 = vrot.lane.b32.xlu0 %v5093_v11, %s4467_s29 }
0x109e   :  { %2276 = vrot.lane.b32.xlu1 %v5097_v0, %s4467_s29 }
0x10a1   :  { %2274 = vrot.lane.b32.xlu0 %v5101_v27, %s4467_s29 }
0x10a2   :  { %2272 = vrot.lane.b32.xlu1 %v5105_v38, %s4467_s29 }
0x10a5   :  { %2270 = vrot.lane.b32.xlu0 %v5109_v12, %s4467_s29 }
0x10a6   :  { %2268 = vrot.lane.b32.xlu1 %v5113_v43, %s4467_s29 }
0x10a9   :  { %2266 = vrot.lane.b32.xlu0 %v5117_v51, %s4467_s29 }
0x10aa   :  { %2264 = vrot.lane.b32.xlu1 %v5122_v28, %s4467_s29 }
0x10ad   :  { %2262 = vrot.lane.b32.xlu0 %v5127_v24, %s4467_s29 }
0x10ae   :  { %2419 = vrot.lane.b32.xlu1 %v4885_v6, %s4469_s9 }
0x1104   :  { %v2231_v36 = vpop.xlane.xlu0 %2230 }
0x1105   :  { %v2233_v47 = vsub.f32 %v2225_v30, %v2231_v36 }
0x1106   :  { %v2229_v19 = vpop.xlane.xlu1 %2228 }
0x1107   :  { %v2236_v55 = vmul.f32 1.442695, %v2233_v47  ;;  %v2232_v57 = vsub.f32 %v2220_v34, %v2229_v19 }
0x1108   :  { %v2293_v60 = vpop.permute.xlu0 %2292 }
0x1109   :  { %4339 = vpow2.f32 %v2236_v55  ;;  %v2234_v63 = vmul.f32 1.442695, %v2232_v57  ;;  %4061 = vmatprep.subr.mxu0 %v2293_v60 }
0x110a   :  { %4062 = vmatpush3.msra.mxu0 %v2293_v60  ;;  %v2291_v3 = vpop.permute.xlu1 %2290 }
0x110b   :  { %4341 = vpow2.f32 %v2234_v63  ;;  %4063 = vmatprep.subr.mxu0 %v2291_v3 }
0x110c   :  { %v2289_v50 = vpop.permute.xlu0 %2288  ;;  %4064 = vmatpush3.msra.mxu0 %v2291_v3 }
0x110d   :  { %4065 = vmatprep.subr.mxu0 %v2289_v50 }
0x110e   :  { %4066 = vmatpush3.msra.mxu0 %v2289_v50  ;;  %v2287_v46 = vpop.permute.xlu1 %2286 }
0x110f   :  { %4067 = vmatprep.subr.mxu0 %v2287_v46 }
0x1110   :  { %v2285_v49 = vpop.permute.xlu0 %2284  ;;  %4068 = vmatpush3.msra.mxu0 %v2287_v46 }
0x1111   :  { %4069 = vmatprep.subr.mxu0 %v2285_v49 }
0x1112   :  { %4070 = vmatpush3.msra.mxu0 %v2285_v49  ;;  %v2283_v25 = vpop.permute.xlu1 %2282 }
0x1113   :  { %4071 = vmatprep.subr.mxu0 %v2283_v25 }
0x1114   :  { %v2279_v52 = vpop.permute.xlu0 %2278  ;;  %4072 = vmatpush3.msra.mxu0 %v2283_v25 }
0x1116   :  { %v5225_v53 = vpop.eup %4339  ;;  %v2281_v54 = vpop.permute.xlu1 %2280 }
0x1117   :  { %2240 = vadd.xlane.f32.xlu0 %v5225_v53  ;;  %4073 = vmatprep.subr.mxu0 %v2281_v54 }
0x1118   :  { %v4342_v56 = vpop.eup %4341  ;;  %v2275_v58 = vpop.permute.xlu0 %2274  ;;  %4074 = vmatpush3.msra.mxu0 %v2281_v54 }
0x1119   :  { %2238 = vadd.xlane.f32.xlu1 %v4342_v56  ;;  %4075 = vmatprep.subr.mxu0 %v2279_v52 }
0x111a   :  { %4076 = vmatpush3.msra.mxu0 %v2279_v52  ;;  %v2277_v59 = vpop.permute.xlu1 %2276 }
0x111b   :  { %4077 = vmatprep.subr.mxu0 %v2277_v59 }
0x111c   :  { %v2271_v62 = vpop.permute.xlu0 %2270  ;;  %4078 = vmatpush3.msra.mxu0 %v2277_v59 }
0x111d   :  { %4079 = vmatprep.subr.mxu0 %v2275_v58 }
0x111e   :  { %4080 = vmatpush3.msra.mxu0 %v2275_v58  ;;  %v2273_v61 = vpop.permute.xlu1 %2272 }
0x111f   :  { %4081 = vmatprep.subr.mxu0 %v2273_v61 }
0x1120   :  { %4082 = vmatpush3.msra.mxu0 %v2273_v61  ;;  %v2267_v39 = vpop.permute.xlu0 %2266 }
0x1121   :  { %4083 = vmatprep.subr.mxu0 %v2271_v62 }
0x1122   :  { %4084 = vmatpush3.msra.mxu0 %v2271_v62  ;;  %v2269_v30 = vpop.permute.xlu1 %2268 }
0x1123   :  { %4085 = vmatprep.subr.mxu0 %v2269_v30 }
0x1124   :  { %4086 = vmatpush3.msra.mxu0 %v2269_v30  ;;  %v2263_v34 = vpop.permute.xlu0 %2262 }
0x1125   :  { %4087 = vmatprep.subr.mxu0 %v2267_v39 }
0x1126   :  { %4088 = vmatpush3.msra.mxu0 %v2267_v39  ;;  %v2265_v32 = vpop.permute.xlu1 %2264 }
0x1127   :  { %4089 = vmatprep.subr.mxu0 %v2265_v32 }
0x1128   :  { %4090 = vmatpush3.msra.mxu0 %v2265_v32 }
0x1129   :  { %4091 = vmatprep.subr.mxu0 %v2263_v34 }
0x112a   :  { %2415 = vrot.lane.b32.xlu1 %v4895_v48, %s4469_s9  ;;  %4092 = vmatpush3.msra.mxu0 %v2263_v34  ;;  %v2420_v36 = vpop.permute.xlu1 %2419 }
0x112b   :  { %4096 = vmatprep.subr.msk.mxu0 %vm330_vm1, %v2420_v36 }
0x112d   :  { %2417 = vrot.lane.b32.xlu0 %v4889_v2, %s4469_s9 }
0x112e   :  { %2411 = vrot.lane.b32.xlu1 %v4907_v10, %s4469_s9 }
0x1131   :  { %2413 = vrot.lane.b32.xlu0 %v4901_v33, %s4469_s9 }
0x1132   :  { %2407 = vrot.lane.b32.xlu1 %v4919_v13, %s4469_s9 }
0x1135   :  { %2409 = vrot.lane.b32.xlu0 %v4913_v35, %s4469_s9 }
0x1136   :  { %2403 = vrot.lane.b32.xlu1 %v4931_v17, %s4469_s9 }
0x1139   :  { %2405 = vrot.lane.b32.xlu0 %v4925_v16, %s4469_s9 }
0x113a   :  { %2399 = vrot.lane.b32.xlu1 %v4943_v21, %s4469_s9 }
0x113d   :  { %2401 = vrot.lane.b32.xlu0 %v4937_v20, %s4469_s9 }
0x113e   :  { %2395 = vrot.lane.b32.xlu1 %v4955_v26, %s4469_s9 }
0x1141   :  { %2397 = vrot.lane.b32.xlu0 %v4949_v22, %s4469_s9 }
0x1142   :  { %2391 = vrot.lane.b32.xlu1 %v4968_v23, %s4469_s9 }
0x1145   :  { %2393 = vrot.lane.b32.xlu0 %v4961_v29, %s4469_s9 }
0x1146   :  { %2385 = vrot.lane.b32.xlu1 %v4985_v18, %s4469_s9 }
0x1149   :  { %2389 = vrot.lane.b32.xlu0 %v4975_v31, %s4469_s9 }
0x114d   :  { %2387 = vrot.lane.b32.xlu0 %v4987_v45, %s4469_s9 }
0x11a0   :  { %v2241_v47 = vpop.xlane.xlu0 %2240 }
0x11a1   :  { %4343 = vrcp.f32 %v2241_v47 }
0x11a2   :  { %v2239_v19 = vpop.xlane.xlu1 %2238 }
0x11a3   :  { %4345 = vrcp.f32 %v2239_v19 }
0x11a4   :  { %v2418_v25 = vpop.permute.xlu0 %2417 }
0x11a6   :  { %v2416_v55 = vpop.permute.xlu1 %2415 }
0x11a8   :  { %v2414_v58 = vpop.permute.xlu0 %2413 }
0x11aa   :  { %v2412_v57 = vpop.permute.xlu1 %2411 }
0x11ac   :  { %v2410_v59 = vpop.permute.xlu0 %2409 }
0x11ae   :  { %v2408_v60 = vpop.permute.xlu1 %2407  ;;  %v4344_v63 = vpop.eup %4343 }
0x11af   :  { %v2245_v49 = vmul.f32 %v4344_v63, %v5225_v53 }
0x11b0   :  { %v4346_v3 = vpop.eup %4345  ;;  %v2406_v62 = vpop.permute.xlu0 %2405 }
0x11b1   :  { %v2244_v50 = vmul.f32 %v4346_v3, %v4342_v56 }
0x11b2   :  { %v2404_v46 = vpop.permute.xlu1 %2403 }
0x11b3   :  { %4093 = vmatprep.mubr.f32.mxu0 %v2244_v50 }
0x11b4   :  { %4094 = vmatmul.mubr.f32.vlgmr.msra.gmra.mxu0 %v2245_v49  ;;  %v2402_v61 = vpop.permute.xlu0 %2401 }
0x11b5   :  { %4097 = vmatpush3.xpose.msk.msra.mxu0 %vm330_vm1, %v2420_v36 }
0x11b6   :  { %4098 = vmatprep.subr.msk.mxu0 %vm330_vm1, %v2418_v25  ;;  %v2400_v52 = vpop.permute.xlu1 %2399 }
0x11b8   :  { %v2398_v39 = vpop.permute.xlu0 %2397 }
0x11b9   :  { %4099 = vmatpush3.xpose.msk.msra.mxu0 %vm330_vm1, %v2418_v25 }
0x11ba   :  { %4100 = vmatprep.subr.msk.mxu0 %vm330_vm1, %v2416_v55  ;;  %v2396_v54 = vpop.permute.xlu1 %2395 }
0x11bc   :  { %v2394_v30 = vpop.permute.xlu0 %2393 }
0x11bd   :  { %4101 = vmatpush3.xpose.msk.msra.mxu0 %vm330_vm1, %v2416_v55 }
0x11be   :  { %4102 = vmatprep.subr.msk.mxu0 %vm330_vm1, %v2414_v58  ;;  %v2392_v56 = vpop.permute.xlu1 %2391 }
0x11c0   :  { %v2390_v32 = vpop.permute.xlu0 %2389 }
0x11c1   :  { %4103 = vmatpush3.xpose.msk.msra.mxu0 %vm330_vm1, %v2414_v58 }
0x11c2   :  { %4104 = vmatprep.subr.msk.mxu0 %vm330_vm1, %v2412_v57  ;;  %v2386_v53 = vpop.permute.xlu1 %2385 }
0x11c3   :  { %4128 = vmatprep.mubr.msk.f32.mxu0 %vm330_vm1, %v2386_v53 }
0x11c4   :  { %v2388_v34 = vpop.permute.xlu0 %2387 }
0x11c5   :  { %4105 = vmatpush3.xpose.msk.msra.mxu0 %vm330_vm1, %v2412_v57 }
0x11c6   :  { %4106 = vmatprep.subr.msk.mxu0 %vm330_vm1, %v2410_v59 }
0x11c9   :  { %4107 = vmatpush3.xpose.msk.msra.mxu0 %vm330_vm1, %v2410_v59 }
0x11ca   :  { %4108 = vmatprep.subr.msk.mxu0 %vm330_vm1, %v2408_v60 }
0x11cd   :  { %4109 = vmatpush3.xpose.msk.msra.mxu0 %vm330_vm1, %v2408_v60 }
0x11ce   :  { %4110 = vmatprep.subr.msk.mxu0 %vm330_vm1, %v2406_v62 }
0x11d1   :  { %4111 = vmatpush3.xpose.msk.msra.mxu0 %vm330_vm1, %v2406_v62 }
0x11d2   :  { %4112 = vmatprep.subr.msk.mxu0 %vm330_vm1, %v2404_v46 }
0x11d5   :  { %4113 = vmatpush3.xpose.msk.msra.mxu0 %vm330_vm1, %v2404_v46 }
0x11d6   :  { %4114 = vmatprep.subr.msk.mxu0 %vm330_vm1, %v2402_v61 }
0x11d9   :  { %4115 = vmatpush3.xpose.msk.msra.mxu0 %vm330_vm1, %v2402_v61 }
0x11da   :  { %4116 = vmatprep.subr.msk.mxu0 %vm330_vm1, %v2400_v52 }
0x11dd   :  { %4117 = vmatpush3.xpose.msk.msra.mxu0 %vm330_vm1, %v2400_v52 }
0x11de   :  { %4118 = vmatprep.subr.msk.mxu0 %vm330_vm1, %v2398_v39 }
0x11e1   :  { %4119 = vmatpush3.xpose.msk.msra.mxu0 %vm330_vm1, %v2398_v39 }
0x11e2   :  { %4120 = vmatprep.subr.msk.mxu0 %vm330_vm1, %v2396_v54 }
0x11e5   :  { %4121 = vmatpush3.xpose.msk.msra.mxu0 %vm330_vm1, %v2396_v54 }
0x11e6   :  { %4122 = vmatprep.subr.msk.mxu0 %vm330_vm1, %v2394_v30 }
0x11e9   :  { %4123 = vmatpush3.xpose.msk.msra.mxu0 %vm330_vm1, %v2394_v30 }
0x11ea   :  { %4124 = vmatprep.subr.msk.mxu0 %vm330_vm1, %v2392_v56 }
0x11ed   :  { %4125 = vmatpush3.xpose.msk.msra.mxu0 %vm330_vm1, %v2392_v56 }
0x11ee   :  { %4126 = vmatprep.subr.msk.mxu0 %vm330_vm1, %v2390_v32 }
0x11f1   :  { %4127 = vmatpush3.xpose.msk.msra.mxu0 %vm330_vm1, %v2390_v32 }
0x11f4   :  { %4129 = vmatmul.mubr.msk.f32.vlgmr.msra.gmra.mxu0 %vm330_vm1, %v2388_v34 }
0x1274   :  { %v5297_v36 = vpop.f32.mrf.mxu0 }
0x1276   :  { %v5299_v47 = vpop.f32.mrf.mxu0 }
0x12b4   :  { %v4130_v19 = vpop.f32.mrf.mxu0 }
0x12b5   :  { %v2529_v55 = vadd.f32 %v4130_v19, %v5036_v44 }
0x12b6   :  { %v2523_v57 = vpop.f32.mrf.mxu0 }
0x12b7   :  { %v2524_v60 = vadd.f32 %v2523_v57, %v5039_v40  ;;  %2534 = vmax.xlane.f32.xlu0 %v2529_v55 }
0x12b9   :  { %2532 = vmax.xlane.f32.xlu1 %v2524_v60 }
0x12ca   :  { %2578 = vrot.lane.b32.xlu1 %v5071_v1, %s4469_s9 }
0x12cd   :  { %2580 = vrot.lane.b32.xlu0 %v5069_v8, %s4469_s9 }
0x12ce   :  { %2574 = vrot.lane.b32.xlu1 %v5077_v37, %s4469_s9 }
0x12d1   :  { %2576 = vrot.lane.b32.xlu0 %v5073_v5, %s4469_s9 }
0x12d2   :  { %2570 = vrot.lane.b32.xlu1 %v5085_v14, %s4469_s9 }
0x12d5   :  { %2572 = vrot.lane.b32.xlu0 %v5081_v4, %s4469_s9 }
0x12d6   :  { %2568 = vrot.lane.b32.xlu1 %v5089_v15, %s4469_s9 }
0x12d9   :  { %2566 = vrot.lane.b32.xlu0 %v5093_v11, %s4469_s9 }
0x12da   :  { %2564 = vrot.lane.b32.xlu1 %v5097_v0, %s4469_s9 }
0x12dd   :  { %2562 = vrot.lane.b32.xlu0 %v5101_v27, %s4469_s9 }
0x12de   :  { %2560 = vrot.lane.b32.xlu1 %v5105_v38, %s4469_s9 }
0x12e1   :  { %2558 = vrot.lane.b32.xlu0 %v5109_v12, %s4469_s9 }
0x12e2   :  { %2556 = vrot.lane.b32.xlu1 %v5113_v43, %s4469_s9 }
0x12e5   :  { %2554 = vrot.lane.b32.xlu0 %v5117_v51, %s4469_s9 }
0x12e6   :  { %2552 = vrot.lane.b32.xlu1 %v5122_v28, %s4469_s9 }
0x12e9   :  { %2550 = vrot.lane.b32.xlu0 %v5127_v24, %s4469_s9 }
0x12ea   :  { %2707 = vrot.lane.b32.xlu1 %v4885_v6, %s4471_s13 }
0x1340   :  { %v2535_v63 = vpop.xlane.xlu0 %2534 }
0x1341   :  { %v2537_v3 = vsub.f32 %v2529_v55, %v2535_v63 }
0x1342   :  { %v2533_v50 = vpop.xlane.xlu1 %2532 }
0x1343   :  { %v2540_v46 = vmul.f32 1.442695, %v2537_v3  ;;  %v2536_v49 = vsub.f32 %v2524_v60, %v2533_v50 }
0x1344   :  { %v2581_v25 = vpop.permute.xlu0 %2580 }
0x1345   :  { %4347 = vpow2.f32 %v2540_v46  ;;  %v2538_v52 = vmul.f32 1.442695, %v2536_v49  ;;  %4131 = vmatprep.subr.mxu1 %v2581_v25 }
0x1346   :  { %4132 = vmatpush3.msra.mxu1 %v2581_v25  ;;  %v2579_v54 = vpop.permute.xlu1 %2578 }
0x1347   :  { %4349 = vpow2.f32 %v2538_v52  ;;  %4133 = vmatprep.subr.mxu1 %v2579_v54 }
0x1348   :  { %v2577_v58 = vpop.permute.xlu0 %2576  ;;  %4134 = vmatpush3.msra.mxu1 %v2579_v54 }
0x1349   :  { %4135 = vmatprep.subr.mxu1 %v2577_v58 }
0x134a   :  { %4136 = vmatpush3.msra.mxu1 %v2577_v58  ;;  %v2575_v56 = vpop.permute.xlu1 %2574 }
0x134b   :  { %4137 = vmatprep.subr.mxu1 %v2575_v56 }
0x134c   :  { %v2573_v6 = vpop.permute.xlu0 %2572  ;;  %4138 = vmatpush3.msra.mxu1 %v2575_v56 }
0x134d   :  { %4139 = vmatprep.subr.mxu1 %v2573_v6 }
0x134e   :  { %4140 = vmatpush3.msra.mxu1 %v2573_v6  ;;  %v2571_v53 = vpop.permute.xlu1 %2570 }
0x134f   :  { %4141 = vmatprep.subr.mxu1 %v2571_v53 }
0x1350   :  { %v2567_v59 = vpop.permute.xlu0 %2566  ;;  %4142 = vmatpush3.msra.mxu1 %v2571_v53 }
0x1352   :  { %v5337_v62 = vpop.eup %4347  ;;  %v2569_v61 = vpop.permute.xlu1 %2568 }
0x1353   :  { %2544 = vadd.xlane.f32.xlu0 %v5337_v62  ;;  %4143 = vmatprep.subr.mxu1 %v2569_v61 }
0x1354   :  { %v4350_v39 = vpop.eup %4349  ;;  %v2563_v30 = vpop.permute.xlu0 %2562  ;;  %4144 = vmatpush3.msra.mxu1 %v2569_v61 }
0x1355   :  { %2542 = vadd.xlane.f32.xlu1 %v4350_v39  ;;  %4145 = vmatprep.subr.mxu1 %v2567_v59 }
0x1356   :  { %4146 = vmatpush3.msra.mxu1 %v2567_v59  ;;  %v2565_v32 = vpop.permute.xlu1 %2564 }
0x1357   :  { %4147 = vmatprep.subr.mxu1 %v2565_v32 }
0x1358   :  { %v2559_v34 = vpop.permute.xlu0 %2558  ;;  %4148 = vmatpush3.msra.mxu1 %v2565_v32 }
0x1359   :  { %4149 = vmatprep.subr.mxu1 %v2563_v30 }
0x135a   :  { %4150 = vmatpush3.msra.mxu1 %v2563_v30  ;;  %v2561_v19 = vpop.permute.xlu1 %2560 }
0x135b   :  { %4151 = vmatprep.subr.mxu1 %v2561_v19 }
0x135c   :  { %4152 = vmatpush3.msra.mxu1 %v2561_v19  ;;  %v2555_v55 = vpop.permute.xlu0 %2554 }
0x135d   :  { %4153 = vmatprep.subr.mxu1 %v2559_v34 }
0x135e   :  { %4154 = vmatpush3.msra.mxu1 %v2559_v34  ;;  %v2557_v57 = vpop.permute.xlu1 %2556 }
0x135f   :  { %4155 = vmatprep.subr.mxu1 %v2557_v57 }
0x1360   :  { %4156 = vmatpush3.msra.mxu1 %v2557_v57  ;;  %v2551_v63 = vpop.permute.xlu0 %2550 }
0x1361   :  { %4157 = vmatprep.subr.mxu1 %v2555_v55 }
0x1362   :  { %4158 = vmatpush3.msra.mxu1 %v2555_v55  ;;  %v2553_v60 = vpop.permute.xlu1 %2552 }
0x1363   :  { %4159 = vmatprep.subr.mxu1 %v2553_v60 }
0x1364   :  { %4160 = vmatpush3.msra.mxu1 %v2553_v60 }
0x1365   :  { %4161 = vmatprep.subr.mxu1 %v2551_v63 }
0x1366   :  { %2703 = vrot.lane.b32.xlu1 %v4895_v48, %s4471_s13  ;;  %4162 = vmatpush3.msra.mxu1 %v2551_v63  ;;  %v2708_v3 = vpop.permute.xlu1 %2707 }
0x1367   :  { %4166 = vmatprep.subr.msk.mxu1 %vm330_vm1, %v2708_v3 }
0x1369   :  { %2705 = vrot.lane.b32.xlu0 %v4889_v2, %s4471_s13 }
0x136a   :  { %2699 = vrot.lane.b32.xlu1 %v4907_v10, %s4471_s13 }
0x136d   :  { %2701 = vrot.lane.b32.xlu0 %v4901_v33, %s4471_s13 }
0x136e   :  { %2695 = vrot.lane.b32.xlu1 %v4919_v13, %s4471_s13 }
0x1371   :  { %2697 = vrot.lane.b32.xlu0 %v4913_v35, %s4471_s13 }
0x1372   :  { %2691 = vrot.lane.b32.xlu1 %v4931_v17, %s4471_s13 }
0x1375   :  { %2693 = vrot.lane.b32.xlu0 %v4925_v16, %s4471_s13 }
0x1376   :  { %2687 = vrot.lane.b32.xlu1 %v4943_v21, %s4471_s13 }
0x1379   :  { %2689 = vrot.lane.b32.xlu0 %v4937_v20, %s4471_s13 }
0x137a   :  { %2683 = vrot.lane.b32.xlu1 %v4955_v26, %s4471_s13 }
0x137d   :  { %2685 = vrot.lane.b32.xlu0 %v4949_v22, %s4471_s13 }
0x137e   :  { %2679 = vrot.lane.b32.xlu1 %v4968_v23, %s4471_s13 }
0x1381   :  { %2681 = vrot.lane.b32.xlu0 %v4961_v29, %s4471_s13 }
0x1382   :  { %2673 = vrot.lane.b32.xlu1 %v4985_v18, %s4471_s13 }
0x1385   :  { %2677 = vrot.lane.b32.xlu0 %v4975_v31, %s4471_s13 }
0x1389   :  { %2675 = vrot.lane.b32.xlu0 %v4987_v45, %s4471_s13 }
0x13dc   :  { %v2545_v2 = vpop.xlane.xlu0 %2544 }
0x13dd   :  { %4351 = vrcp.f32 %v2545_v2  ;;  %v2993_v2 = vld [vmem:[#allocation7 + $0x70] sm:$0xff] }
0x13de   :  { %v2543_v48 = vpop.xlane.xlu1 %2542 }
0x13df   :  { %4353 = vrcp.f32 %v2543_v48  ;;  %v2992_v48 = vld [vmem:[#allocation7 + $0x68] sm:$0xff] }
0x13e0   :  { %v2706_v22 = vpop.permute.xlu0 %2705 }
0x13e2   :  { %v2704_v33 = vpop.permute.xlu1 %2703 }
0x13e4   :  { %v2702_v23 = vpop.permute.xlu0 %2701 }
0x13e6   :  { %v2700_v10 = vpop.permute.xlu1 %2699 }
0x13e8   :  { %v2698_v45 = vpop.permute.xlu0 %2697 }
0x13ea   :  { %v2696_v35 = vpop.permute.xlu1 %2695  ;;  %v4352_v13 = vpop.eup %4351 }
0x13eb   :  { %v2549_v21 = vmul.f32 %v4352_v13, %v5337_v62 }
0x13ec   :  { %v4354_v16 = vpop.eup %4353  ;;  %v2694_v50 = vpop.permute.xlu0 %2693 }
0x13ed   :  { %v2548_v17 = vmul.f32 %v4354_v16, %v4350_v39 }
0x13ee   :  { %v2692_v20 = vpop.permute.xlu1 %2691 }
0x13ef   :  { %4163 = vmatprep.mubr.f32.mxu1 %v2548_v17 }
0x13f0   :  { %4164 = vmatmul.mubr.f32.vlgmr.msra.gmra.mxu1 %v2549_v21  ;;  %v2690_v46 = vpop.permute.xlu0 %2689 }
0x13f1   :  { %4167 = vmatpush3.xpose.msk.msra.mxu1 %vm330_vm1, %v2708_v3  ;;  %v2994_v3 = vld [vmem:[#allocation7 + $0x78] sm:$0xff] }
0x13f2   :  { %4168 = vmatprep.subr.msk.mxu1 %vm330_vm1, %v2706_v22  ;;  %v2688_v26 = vpop.permute.xlu1 %2687 }
0x13f4   :  { %v2686_v49 = vpop.permute.xlu0 %2685 }
0x13f5   :  { %4169 = vmatpush3.xpose.msk.msra.mxu1 %vm330_vm1, %v2706_v22 }
0x13f6   :  { %4170 = vmatprep.subr.msk.mxu1 %vm330_vm1, %v2704_v33  ;;  %v2684_v29 = vpop.permute.xlu1 %2683 }
0x13f8   :  { %v2682_v25 = vpop.permute.xlu0 %2681 }
0x13f9   :  { %4171 = vmatpush3.xpose.msk.msra.mxu1 %vm330_vm1, %v2704_v33  ;;  %v2991_v33 = vld [vmem:[#allocation7 + $0x60] sm:$0xff] }
0x13fa   :  { %4172 = vmatprep.subr.msk.mxu1 %vm330_vm1, %v2702_v23  ;;  %v2680_v31 = vpop.permute.xlu1 %2679 }
0x13fc   :  { %v2678_v52 = vpop.permute.xlu0 %2677 }
0x13fd   :  { %4173 = vmatpush3.xpose.msk.msra.mxu1 %vm330_vm1, %v2702_v23 }
0x13fe   :  { %4174 = vmatprep.subr.msk.mxu1 %vm330_vm1, %v2700_v10  ;;  %v2674_v18 = vpop.permute.xlu1 %2673 }
0x13ff   :  { %4198 = vmatprep.mubr.msk.f32.mxu1 %vm330_vm1, %v2674_v18 }
0x1400   :  { %v2676_v54 = vpop.permute.xlu0 %2675 }
0x1401   :  { %4175 = vmatpush3.xpose.msk.msra.mxu1 %vm330_vm1, %v2700_v10 }
0x1402   :  { %4176 = vmatprep.subr.msk.mxu1 %vm330_vm1, %v2698_v45 }
0x1405   :  { %4177 = vmatpush3.xpose.msk.msra.mxu1 %vm330_vm1, %v2698_v45 }
0x1406   :  { %4178 = vmatprep.subr.msk.mxu1 %vm330_vm1, %v2696_v35 }
0x1409   :  { %4179 = vmatpush3.xpose.msk.msra.mxu1 %vm330_vm1, %v2696_v35 }
0x140a   :  { %4180 = vmatprep.subr.msk.mxu1 %vm330_vm1, %v2694_v50 }
0x140d   :  { %4181 = vmatpush3.xpose.msk.msra.mxu1 %vm330_vm1, %v2694_v50  ;;  %v3517_v50 = vld [vmem:[#allocation7 + $0xf8] ss:$0 sm:$0xff] }
0x140e   :  { %4182 = vmatprep.subr.msk.mxu1 %vm330_vm1, %v2692_v20 }
0x1411   :  { %4183 = vmatpush3.xpose.msk.msra.mxu1 %vm330_vm1, %v2692_v20 }
0x1412   :  { %4184 = vmatprep.subr.msk.mxu1 %vm330_vm1, %v2690_v46 }
0x1415   :  { %4185 = vmatpush3.xpose.msk.msra.mxu1 %vm330_vm1, %v2690_v46 }
0x1416   :  { %4186 = vmatprep.subr.msk.mxu1 %vm330_vm1, %v2688_v26 }
0x1419   :  { %4187 = vmatpush3.xpose.msk.msra.mxu1 %vm330_vm1, %v2688_v26 }
0x141a   :  { %4188 = vmatprep.subr.msk.mxu1 %vm330_vm1, %v2686_v49 }
0x141d   :  { %4189 = vmatpush3.xpose.msk.msra.mxu1 %vm330_vm1, %v2686_v49 }
0x141e   :  { %4190 = vmatprep.subr.msk.mxu1 %vm330_vm1, %v2684_v29 }
0x1421   :  { %4191 = vmatpush3.xpose.msk.msra.mxu1 %vm330_vm1, %v2684_v29 }
0x1422   :  { %4192 = vmatprep.subr.msk.mxu1 %vm330_vm1, %v2682_v25 }
0x1425   :  { %4193 = vmatpush3.xpose.msk.msra.mxu1 %vm330_vm1, %v2682_v25 }
0x1426   :  { %4194 = vmatprep.subr.msk.mxu1 %vm330_vm1, %v2680_v31 }
0x1429   :  { %4195 = vmatpush3.xpose.msk.msra.mxu1 %vm330_vm1, %v2680_v31 }
0x142a   :  { %4196 = vmatprep.subr.msk.mxu1 %vm330_vm1, %v2678_v52 }
0x142d   :  { %4197 = vmatpush3.xpose.msk.msra.mxu1 %vm330_vm1, %v2678_v52 }
0x1430   :  { %4199 = vmatmul.mubr.msk.f32.vlgmr.msra.gmra.mxu1 %vm330_vm1, %v2676_v54 }
0x14b0   :  { %v5409_v58 = vpop.f32.mrf.mxu1 }
0x14b2   :  { %v5411_v56 = vpop.f32.mrf.mxu1 }
0x14f0   :  { %v4200_v6 = vpop.f32.mrf.mxu1 }
0x14f1   :  { %v2817_v53 = vadd.f32 %v4200_v6, %v5036_v44 }
0x14f2   :  { %v2811_v59 = vpop.f32.mrf.mxu1 }
0x14f3   :  { %v2812_v62 = vadd.f32 %v2811_v59, %v5039_v40  ;;  %2822 = vmax.xlane.f32.xlu0 %v2817_v53 }
0x14f5   :  { %2820 = vmax.xlane.f32.xlu1 %v2812_v62 }
0x1506   :  { %2866 = vrot.lane.b32.xlu1 %v5071_v1, %s4471_s13 }
0x1509   :  { %2868 = vrot.lane.b32.xlu0 %v5069_v8, %s4471_s13 }
0x150a   :  { %2862 = vrot.lane.b32.xlu1 %v5077_v37, %s4471_s13 }
0x150d   :  { %2864 = vrot.lane.b32.xlu0 %v5073_v5, %s4471_s13 }
0x150e   :  { %2860 = vrot.lane.b32.xlu1 %v5081_v4, %s4471_s13 }
0x1511   :  { %2858 = vrot.lane.b32.xlu0 %v5085_v14, %s4471_s13 }
0x1512   :  { %2856 = vrot.lane.b32.xlu1 %v5089_v15, %s4471_s13 }
0x1515   :  { %2854 = vrot.lane.b32.xlu0 %v5093_v11, %s4471_s13 }
0x1516   :  { %2852 = vrot.lane.b32.xlu1 %v5097_v0, %s4471_s13 }
0x1519   :  { %2850 = vrot.lane.b32.xlu0 %v5101_v27, %s4471_s13 }
0x151a   :  { %2848 = vrot.lane.b32.xlu1 %v5105_v38, %s4471_s13 }
0x151d   :  { %2846 = vrot.lane.b32.xlu0 %v5109_v12, %s4471_s13 }
0x151e   :  { %2844 = vrot.lane.b32.xlu1 %v5113_v43, %s4471_s13 }
0x1521   :  { %2842 = vrot.lane.b32.xlu0 %v5117_v51, %s4471_s13 }
0x157c   :  { %v2823_v44 = vpop.xlane.xlu0 %2822 }
0x157d   :  { %v2825_v40 = vsub.f32 %v2817_v53, %v2823_v44 }
0x157e   :  { %v2821_v8 = vpop.xlane.xlu1 %2820 }
0x157f   :  { %v2828_v1 = vmul.f32 1.442695, %v2825_v40  ;;  %v2824_v5 = vsub.f32 %v2812_v62, %v2821_v8 }
0x1580   :  { %v2869_v37 = vpop.permute.xlu0 %2868 }
0x1581   :  { %4355 = vpow2.f32 %v2828_v1  ;;  %v2826_v4 = vmul.f32 1.442695, %v2824_v5  ;;  %4201 = vmatprep.subr.mxu0 %v2869_v37  ;;  %v3125_v5 = vld [vmem:[#allocation7 + $0x90] sm:$0xff] }
0x1582   :  { %4202 = vmatpush3.msra.mxu0 %v2869_v37  ;;  %v2867_v14 = vpop.permute.xlu1 %2866  ;;  %v3124_v37 = vld [vmem:[#allocation7 + $0x88] sm:$0xff] }
0x1583   :  { %4357 = vpow2.f32 %v2826_v4  ;;  %4203 = vmatprep.subr.mxu0 %v2867_v14  ;;  %v3123_v4 = vld [vmem:[#allocation7 + $0x80] sm:$0xff] }
0x1584   :  { %v2865_v15 = vpop.permute.xlu0 %2864  ;;  %4204 = vmatpush3.msra.mxu0 %v2867_v14  ;;  %v3222_v14 = vld [vmem:[#allocation7 + $0xd8] sm:$0xff] }
0x1585   :  { %4205 = vmatprep.subr.mxu0 %v2865_v15 }
0x1586   :  { %4206 = vmatpush3.msra.mxu0 %v2865_v15  ;;  %v2863_v11 = vpop.permute.xlu1 %2862  ;;  %v3221_v15 = vld [vmem:[#allocation7 + $0xd0] sm:$0xff] }
0x1587   :  { %4207 = vmatprep.subr.mxu0 %v2863_v11 }
0x1588   :  { %v2859_v0 = vpop.permute.xlu0 %2858  ;;  %4208 = vmatpush3.msra.mxu0 %v2863_v11  ;;  %v3220_v11 = vld [vmem:[#allocation7 + $0xc8] sm:$0xff] }
0x158a   :  { %v2861_v27 = vpop.permute.xlu1 %2860 }
0x158b   :  { %4209 = vmatprep.subr.mxu0 %v2861_v27 }
0x158c   :  { %v2855_v38 = vpop.permute.xlu0 %2854  ;;  %4210 = vmatpush3.msra.mxu0 %v2861_v27 }
0x158d   :  { %4211 = vmatprep.subr.mxu0 %v2859_v0 }
0x158e   :  { %v4356_v12 = vpop.eup %4355  ;;  %4212 = vmatpush3.msra.mxu0 %v2859_v0  ;;  %v2857_v43 = vpop.permute.xlu1 %2856  ;;  %v3219_v0 = vld [vmem:[#allocation7 + $0xc0] sm:$0xff] }
0x158f   :  { %2832 = vadd.xlane.f32.xlu0 %v4356_v12  ;;  %4213 = vmatprep.subr.mxu0 %v2857_v43 }
0x1590   :  { %v4358_v51 = vpop.eup %4357  ;;  %v2851_v61 = vpop.permute.xlu0 %2850  ;;  %4214 = vmatpush3.msra.mxu0 %v2857_v43 }
0x1591   :  { %2830 = vadd.xlane.f32.xlu1 %v4358_v51  ;;  %4215 = vmatprep.subr.mxu0 %v2855_v38 }
0x1592   :  { %4216 = vmatpush3.msra.mxu0 %v2855_v38  ;;  %v2853_v39 = vpop.permute.xlu1 %2852 }
0x1593   :  { %4217 = vmatprep.subr.mxu0 %v2853_v39 }
0x1594   :  { %4218 = vmatpush3.msra.mxu0 %v2853_v39  ;;  %v2847_v30 = vpop.permute.xlu0 %2846 }
0x1595   :  { %4219 = vmatprep.subr.mxu0 %v2851_v61 }
0x1596   :  { %4220 = vmatpush3.msra.mxu0 %v2851_v61  ;;  %v2849_v32 = vpop.permute.xlu1 %2848 }
0x1597   :  { %4221 = vmatprep.subr.mxu0 %v2849_v32 }
0x1598   :  { %4222 = vmatpush3.msra.mxu0 %v2849_v32  ;;  %v2843_v19 = vpop.permute.xlu0 %2842  ;;  %v3520_v32 = vld [vmem:[#allocation7 + $0x120] ss:$0 sm:$0xff] }
0x1599   :  { %4223 = vmatprep.subr.mxu0 %v2847_v30 }
0x159a   :  { %4224 = vmatpush3.msra.mxu0 %v2847_v30  ;;  %v2845_v34 = vpop.permute.xlu1 %2844 }
0x159b   :  { %4225 = vmatprep.subr.mxu0 %v2845_v34 }
0x159c   :  { %4226 = vmatpush3.msra.mxu0 %v2845_v34 }
0x159d   :  { %4227 = vmatprep.subr.mxu0 %v2843_v19 }
0x159e   :  { %4228 = vmatpush3.msra.mxu0 %v2843_v19 }
0x15a2   :  { %2840 = vrot.lane.b32.xlu1 %v5122_v28, %s4471_s13 }
0x15a5   :  { %2838 = vrot.lane.b32.xlu0 %v5127_v24, %s4471_s13 }
0x15a6   :  { %2963 = vrot.lane.b32.xlu1 %v5299_v47, %s4460_s11 }
0x15a9   :  { %2965 = vrot.lane.b32.xlu0 %v5297_v36, %s4460_s11 }
0x15aa   :  { %2971 = vrot.lane.b32.xlu1 %v5411_v56, %s4472_s14 }
0x15ad   :  { %2973 = vrot.lane.b32.xlu0 %v5409_v58, %s4472_s14 }
0x1618   :  { %v2833_v55 = vpop.xlane.xlu0 %2832 }
0x1619   :  { %4359 = vrcp.f32 %v2833_v55 }
0x161a   :  { %v2831_v57 = vpop.xlane.xlu1 %2830 }
0x161b   :  { %4361 = vrcp.f32 %v2831_v57 }
0x161c   :  { %v2839_v60 = vpop.permute.xlu0 %2838 }
0x161e   :  { %v2841_v28 = vpop.permute.xlu1 %2840 }
0x161f   :  { %4229 = vmatprep.subr.mxu0 %v2841_v28 }
0x1620   :  { %4230 = vmatpush3.msra.mxu0 %v2841_v28  ;;  %v2966_v13 = vpop.permute.xlu0 %2965  ;;  %v3521_v28 = vld [vmem:[#allocation7 + $0x128] ss:$0 sm:$0xff] }
0x1621   :  { %4231 = vmatprep.subr.mxu0 %v2839_v60  ;;  %v2986_v26 = vsel %vm330_vm1, %v5185_v9, %v2966_v13 }
0x1622   :  { %4232 = vmatpush3.msra.mxu0 %v2839_v60  ;;  %v2964_v16 = vpop.permute.xlu1 %2963 }
0x1623   :  { %4236 = vmatprep.subr.mxu0 %v2994_v3  ;;  %v2985_v21 = vsel %vm330_vm1, %v5187_v7, %v2964_v16  ;;  %vm3228_vm1 = vcmask 523264  }
0x1624   :  { %v2974_v17 = vpop.permute.xlu0 %2973 }
0x1625   :  { %v2988_v31 = vsel %vm416_vm8, %v2986_v26, %v2974_v17  ;;  %v3525_v17 = vld [vmem:[#allocation7 + $0x108] ss:$0 sm:$0xff] }
0x1626   :  { %v4360_v24 = vpop.eup %4359  ;;  %v2972_v20 = vpop.permute.xlu1 %2971 }
0x1627   :  { %v2837_v36 = vmul.f32 %v4360_v24, %v4356_v12  ;;  %v2987_v29 = vsel %vm416_vm8, %v2985_v21, %v2972_v20 }
0x1628   :  { %v4362_v47 = vpop.eup %4361 }
0x1629   :  { %v2836_v63 = vmul.f32 %v4362_v47, %v4358_v51  ;;  %v3218_v47 = vld [vmem:[#allocation7 + $0xb8] sm:$0xff] }
0x162b   :  { %4233 = vmatprep.mubr.f32.mxu0 %v2836_v63  ;;  %v3217_v63 = vld [vmem:[#allocation7 + $0xb0] sm:$0xff] }
0x162c   :  { %4234 = vmatmul.mubr.f32.vlgmr.msra.gmra.mxu0 %v2837_v36  ;;  %v3216_v36 = vld [vmem:[#allocation7 + $0xa8] sm:$0xff] }
0x162d   :  { %4237 = vmatpush3.msra.mxu0 %v2994_v3  ;;  %v3215_v3 = vld [vmem:[#allocation7 + $0xa0] sm:$0xff] }
0x162e   :  { %4238 = vmatprep.subr.mxu0 %v2993_v2 }
0x162f   :  { %4239 = vmatpush3.msra.mxu0 %v2993_v2  ;;  %v3522_v2 = vld [vmem:[#allocation7 + $0x100] ss:$0 sm:$0xff] }
0x1630   :  { %4240 = vmatprep.subr.mxu0 %v2992_v48 }
0x1631   :  { %4241 = vmatpush3.msra.mxu0 %v2992_v48 }
0x1632   :  { %4242 = vmatprep.subr.mxu0 %v2991_v33 }
0x1633   :  { %4243 = vmatpush3.msra.mxu0 %v2991_v33 }
0x1634   :  { %4258 = vmatprep.subr.mxu0 %v3222_v14 }
0x16ec   :  { %v4235_v10 = vpop.f32.mrf.mxu0 }
0x16ed   :  { %2981 = vrot.lane.b32.xlu0 %v4235_v10, %s4473_s8 }
0x16ee   :  { %v2952_v35 = vpop.f32.mrf.mxu0 }
0x16ef   :  { %2979 = vrot.lane.b32.xlu1 %v2952_v35, %s4473_s8 }
0x175f   :  { %v2982_v22 = vpop.permute.xlu0 %2981 }
0x1760   :  { %v2990_v45 = vsel %vm1158_vm9, %v2988_v31, %v2982_v22 }
0x1761   :  { %v2980_v23 = vpop.permute.xlu1 %2979 }
0x1762   :  { %v2989_v18 = vsel %vm1158_vm9, %v2987_v29, %v2980_v23 }
0x1763   :  { %4244 = vmatprep.mubr.msk.f32.mxu0 %vm139_vm0, %v2989_v18 }
0x1764   :  { %4245 = vmatmul.mubr.msk.f32.vlgmr.msra.gmra.mxu0 %vm139_vm0, %v2990_v45 }
0x1765   :  { %4259 = vmatpush3.msra.mxu0 %v3222_v14 }
0x1766   :  { %4260 = vmatprep.subr.mxu0 %v3221_v15 }
0x1767   :  { %4261 = vmatpush3.msra.mxu0 %v3221_v15 }
0x1768   :  { %4262 = vmatprep.subr.mxu0 %v3220_v11 }
0x1769   :  { %4263 = vmatpush3.msra.mxu0 %v3220_v11 }
0x176a   :  { %4264 = vmatprep.subr.mxu0 %v3219_v0 }
0x176b   :  { %4265 = vmatpush3.msra.mxu0 %v3219_v0 }
0x176c   :  { %4266 = vmatprep.subr.mxu0 %v3218_v47 }
0x176d   :  { %4267 = vmatpush3.msra.mxu0 %v3218_v47 }
0x176e   :  { %4268 = vmatprep.subr.mxu0 %v3217_v63 }
0x176f   :  { %4269 = vmatpush3.msra.mxu0 %v3217_v63 }
0x1770   :  { %4270 = vmatprep.subr.mxu0 %v3216_v36 }
0x1771   :  { %4271 = vmatpush3.msra.mxu0 %v3216_v36 }
0x1772   :  { %4272 = vmatprep.subr.mxu0 %v3215_v3 }
0x1773   :  { %4273 = vmatpush3.msra.mxu0 %v3215_v3 }
0x1824   :  { %v4246_v46 = vpop.f32.mrf.mxu0 }
0x1825   :  { %v3078_v7 = vadd.f32 %v4246_v46, %v3517_v50 }
0x1826   :  { %v3072_v49 = vpop.f32.mrf.mxu0 }
0x1827   :  { %v3082_v25 = vadd.f32 %v3078_v7, %v4873_v42  ;;  %v3073_v9 = vadd.f32 %v3517_v50, %v3072_v49 }
0x1829   :  { %v3081_v52 = vadd.f32 %v3073_v9, %v4871_v41  ;;  %v3086_v54 = vsel %vm139_vm0, %v3082_v25, 0.0  ;;  %v3126_v41 = vld [vmem:[#allocation7 + $0x98] sm:$0xff] }
0x182a   :  { %3087 = vadd.xlane.f32.xlu0 %v3086_v54  ;;  %4247 = vmatprep.subr.mxu1 %v3126_v41 }
0x182b   :  { %v3083_v58 = vsel %vm139_vm0, %v3081_v52, 0.0  ;;  %4248 = vmatpush3.msra.mxu1 %v3126_v41  ;;  %v3529_v41 = vld [vmem:[#allocation7 + $0x138] ss:$0 sm:$0xff] }
0x182c   :  { %3084 = vadd.xlane.f32.xlu1 %v3083_v58  ;;  %4249 = vmatprep.subr.mxu1 %v3125_v5 }
0x182d   :  { %4250 = vmatpush3.msra.mxu1 %v3125_v5 }
0x182e   :  { %4251 = vmatprep.subr.mxu1 %v3124_v37 }
0x182f   :  { %4252 = vmatpush3.msra.mxu1 %v3124_v37 }
0x1830   :  { %4253 = vmatprep.subr.mxu1 %v3123_v4 }
0x1831   :  { %4254 = vmatpush3.msra.mxu1 %v3123_v4 }
0x18b3   :  { %v3088_v56 = vpop.xlane.xlu0 %3087 }
0x18b4   :  { %v3090_v6 = vmul.f32 0.03125, %v3088_v56 }
0x18b5   :  { %v3085_v53 = vpop.xlane.xlu1 %3084 }
0x18b6   :  { %v3092_v59 = vsub.f32 %v3082_v25, %v3090_v6  ;;  %v3089_v62 = vmul.f32 0.03125, %v3085_v53 }
0x18b8   :  { %v3091_v44 = vsub.f32 %v3081_v52, %v3089_v62  ;;  %v3094_v40 = vmul.f32 %v3092_v59, %v3092_v59 }
0x18ba   :  { %v3098_v8 = vsel %vm139_vm0, %v3094_v40, 0.0  ;;  %v3093_v1 = vmul.f32 %v3091_v44, %v3091_v44 }
0x18bb   :  { %3099 = vadd.xlane.f32.xlu1 %v3098_v8  ;;  %v3528_v8 = vld [vmem:[#allocation7 + $0x130] ss:$0 sm:$0xff] }
0x18bc   :  { %v3095_v42 = vsel %vm139_vm0, %v3093_v1, 0.0 }
0x18bd   :  { %3096 = vadd.xlane.f32.xlu0 %v3095_v42 }
0x1944   :  { %v3100_v27 = vpop.xlane.xlu1 %3099 }
0x1945   :  { %v3102_v38 = vmul.f32 0.03125, %v3100_v27 }
0x1946   :  { %v3097_v12 = vpop.xlane.xlu0 %3096 }
0x1947   :  { %v3104_v43 = vadd.f32 1e-05, %v3102_v38  ;;  %v3101_v51 = vmul.f32 0.03125, %v3097_v12 }
0x1949   :  { %4363 = vrsqrt.f32 %v3104_v43  ;;  %v3103_v61 = vadd.f32 1e-05, %v3101_v51 }
0x194b   :  { %4365 = vrsqrt.f32 %v3103_v61 }
0x1956   :  { %v4364_v39 = vpop.eup %4363 }
0x1957   :  { %v3108_v30 = vmul.f32 %v4364_v39, %v3092_v59 }
0x1958   :  { %v4366_v34 = vpop.eup %4365 }
0x1959   :  { %v3107_v19 = vmul.f32 %v4366_v34, %v3091_v44  ;;  %v3115_v55 = vmul.f32 %v3520_v32, %v3108_v30 }
0x195b   :  { %v3114_v57 = vmul.f32 %v3520_v32, %v3107_v19  ;;  %v3122_v24 = vadd.f32 %v3521_v28, %v3115_v55 }
0x195d   :  { %v3121_v60 = vadd.f32 %v3521_v28, %v3114_v57 }
0x195f   :  { %4255 = vmatprep.mubr.msk.f32.mxu1 %vm139_vm0, %v3121_v60 }
0x1960   :  { %4256 = vmatmul.mubr.msk.f32.vlgmr.msra.gmra.mxu1 %vm139_vm0, %v3122_v24 }
0x1a20   :  { %v4257_v48 = vpop.f32.mrf.mxu1 }
0x1a21   :  { %v3210_v33 = vadd.f32 %v4257_v48, %v3522_v2 }
0x1a22   :  { %v3204_v10 = vpop.f32.mrf.mxu1 }
0x1a23   :  { %v3205_v35 = vadd.f32 %v3522_v2, %v3204_v10  ;;  %v3214_v16 = vmax.f32 %v3210_v33, 0.0 }
0x1a25   :  { %v3213_v13 = vmax.f32 %v3205_v35, 0.0 }
0x1a27   :  { %4274 = vmatprep.mubr.msk.f32.mxu0 %vm3228_vm1, %v3213_v13 }
0x1a28   :  { %4275 = vmatmul.mubr.msk.f32.vlgmr.msra.gmra.mxu0 %vm3228_vm1, %v3214_v16 }
0x1ae8   :  { %v4276_v20 = vpop.f32.mrf.mxu0 }
0x1ae9   :  { %v3307_v21 = vadd.f32 %v4276_v20, %v3525_v17 }
0x1aea   :  { %v3301_v22 = vpop.f32.mrf.mxu0 }
0x1aeb   :  { %v3311_v26 = vadd.f32 %v3307_v21, %v3122_v24  ;;  %v3302_v29 = vadd.f32 %v3525_v17, %v3301_v22 }
0x1aed   :  { %v3310_v23 = vadd.f32 %v3302_v29, %v3121_v60  ;;  %v3315_v31 = vsel %vm139_vm0, %v3311_v26, 0.0 }
0x1aee   :  { %3316 = vadd.xlane.f32.xlu1 %v3315_v31 }
0x1aef   :  { %v3312_v18 = vsel %vm139_vm0, %v3310_v23, 0.0 }
0x1af0   :  { %3313 = vadd.xlane.f32.xlu0 %v3312_v18 }
0x1b77   :  { %v3317_v45 = vpop.xlane.xlu1 %3316 }
0x1b78   :  { %v3319_v50 = vmul.f32 0.03125, %v3317_v45 }
0x1b79   :  { %v3314_v46 = vpop.xlane.xlu0 %3313 }
0x1b7a   :  { %v3321_v7 = vsub.f32 %v3311_v26, %v3319_v50  ;;  %v3318_v49 = vmul.f32 0.03125, %v3314_v46 }
0x1b7c   :  { %v3320_v25 = vsub.f32 %v3310_v23, %v3318_v49  ;;  %v3323_v9 = vmul.f32 %v3321_v7, %v3321_v7 }
0x1b7e   :  { %v3327_v52 = vsel %vm139_vm0, %v3323_v9, 0.0  ;;  %v3322_v54 = vmul.f32 %v3320_v25, %v3320_v25 }
0x1b7f   :  { %3328 = vadd.xlane.f32.xlu1 %v3327_v52 }
0x1b80   :  { %v3324_v58 = vsel %vm139_vm0, %v3322_v54, 0.0 }
0x1b81   :  { %3325 = vadd.xlane.f32.xlu0 %v3324_v58 }
0x1c08   :  { %v3329_v56 = vpop.xlane.xlu1 %3328 }
0x1c09   :  { %v3331_v6 = vmul.f32 0.03125, %v3329_v56 }
0x1c0a   :  { %v3326_v53 = vpop.xlane.xlu0 %3325 }
0x1c0b   :  { %v3333_v59 = vadd.f32 1e-05, %v3331_v6  ;;  %v3330_v62 = vmul.f32 0.03125, %v3326_v53 }
0x1c0d   :  { %4367 = vrsqrt.f32 %v3333_v59  ;;  %v3332_v44 = vadd.f32 1e-05, %v3330_v62 }
0x1c0f   :  { %4369 = vrsqrt.f32 %v3332_v44 }
0x1c1a   :  { %v4368_v40 = vpop.eup %4367 }
0x1c1b   :  { %v3337_v1 = vmul.f32 %v4368_v40, %v3321_v7 }
0x1c1c   :  { %v4370_v42 = vpop.eup %4369 }
0x1c1d   :  { %v3336_v5 = vmul.f32 %v4370_v42, %v3320_v25  ;;  %v3344_v37 = vmul.f32 %v3528_v8, %v3337_v1 }
0x1c1f   :  { %v3343_v4 = vmul.f32 %v3528_v8, %v3336_v5  ;;  %v3351_v14 = vadd.f32 %v3529_v41, %v3344_v37 }
0x1c21   :  { %v3350_v15 = vadd.f32 %v3529_v41, %v3343_v4  ;;  %3353 = vst.msk [vmem:[#allocation8 + $0x8] sm:$0xff] %vm139_vm0, %v3351_v14 }
0x1c23   :  { %3352 = vst.msk [vmem:[#allocation8] sm:$0xff] %vm139_vm0, %v3350_v15 }
0x1c24   :  { %4442 = shalt.err (!%p4439_p5)
}
0x1c25   :  { %3365 = dma.vmem_to_hbm [thread:$0]  %s3360_s20, 256, %s5494_s7, [#allocation4], %s4459_s10, %s4459_s10, %s4460_s11  }
0x1c26   :  { %4455 = dma.done.wait [#allocation4], 256  }
0x1c27   :  { %4456 = vsyncadd [#allocation4], 4294967040 }
0x1c28   :  { %3373 = vsyncpa [#allocation3], 1 }
0x1c29   :  { %3374 = vsyncpa [#allocation6], 1 }
0x1c2a   :  { %3375 = vsyncpa [#allocation4], 1 }

</bundles_post_ra>
